<compile_context>
chip_gen: v7x
topology: tpu7x:2x2x1
jax: 0.10.0
libtpu: 0.0.40
codegen_flags: <defaults>
</compile_context>

<pallas_src>
import functools

import jax
import jax.numpy as jnp
from jax import lax
from jax.experimental import pallas as pl
from jax.experimental.pallas import tpu as pltpu

LN_EPS = 1e-5          # PyTorch nn.LayerNorm default eps
LEAKY_SLOPE = 0.01     # PyTorch nn.LeakyReLU default negative_slope


def _layernorm(x, g, b):
    mu = jnp.mean(x, axis=-1, keepdims=True)
    var = jnp.mean(jnp.square(x - mu), axis=-1, keepdims=True)
    return (x - mu) * lax.rsqrt(var + LN_EPS) * g + b


def _leaky_relu(x):
    return jnp.where(x > 0, x, LEAKY_SLOPE * x)


# --------------------------- per-layer Pallas kernel ------------------------

def moge_layer_kernel(conv_w_ref, conv_b_ref,                 # SMEM (L,3), (L,1)
                      x_ref,                                  # (Nb, Tp, D) initial acts
                      wq_ref, wk_ref, wv_ref,                 # (1, H, D, dh)
                      wout_ref,                               # (1, H, dh, D)
                      lvec_ref,                               # (1, 5, D)
                      ge_ref,                                 # (1, D, EC)
                      evec_ref,                               # (1, 2, EC)
                      wstack_ref,                             # (1, EC, EC)
                      ag_ref, tce_ref, sec_ref,               # (D,D), (C,EC), (EC,C)
                      fcw_ref, fcb_ref,                       # (D,K), (1,K)
                      o_ref,                                  # (1, Nb, K)
                      act_ref,                                # VMEM scratch (Nb, Tp, D)
                      *, num_layers, heads, dim_head, num_experts, num_points,
                      seq_len):
    l = pl.program_id(1)
    Nb, Tp, D = act_ref.shape
    V = num_points
    C = D // V
    E = num_experts
    EC = E * C
    R = Nb * Tp
    scale = dim_head ** -0.5

    # layer 0: pull the (host-preprocessed) activations into persistent scratch.
    @pl.when(l == 0)
    def _():
        act_ref[...] = x_ref[...]

    x3 = act_ref[...]                                         # (Nb, Tp, D)
    x2 = x3.reshape(R, D)                                     # tile-aligned merge

    lvec = lvec_ref[0]                                        # (5, D)
    bout, aln_g, aln_b = lvec[0:1], lvec[1:2], lvec[2:3]
    squ_g, squ_b = lvec[3:4], lvec[4:5]
    evec = evec_ref[0]                                        # (2, EC)
    bge, bgcn = evec[0:1], evec[1:2]

    # ------------------ Attention -> LN -> LeakyReLU -> + x ------------------
    kmask = lax.broadcasted_iota(jnp.int32, (1, 1, Tp), 2) < seq_len
    proj = jnp.zeros((R, D), jnp.float32)
    for h in range(heads):
        q = jnp.dot(x2, wq_ref[0, h], preferred_element_type=jnp.float32)
        k = jnp.dot(x2, wk_ref[0, h], preferred_element_type=jnp.float32)
        v = jnp.dot(x2, wv_ref[0, h], preferred_element_type=jnp.float32)
        q3 = q.reshape(Nb, Tp, dim_head)
        k3 = k.reshape(Nb, Tp, dim_head)
        v3 = v.reshape(Nb, Tp, dim_head)
        dots = lax.dot_general(q3, k3, (((2,), (2,)), ((0,), (0,))),
                               preferred_element_type=jnp.float32) * scale
        dots = jnp.where(kmask, dots, -1e30)                  # mask padded keys
        dots = dots - jnp.max(dots, axis=-1, keepdims=True)
        p = jnp.exp(dots)
        p = p * pl.reciprocal(jnp.sum(p, axis=-1, keepdims=True), approx=True)
        oh = lax.dot_general(p, v3, (((2,), (1,)), ((0,), (0,))),
                             preferred_element_type=jnp.float32)   # (Nb, Tp, dh)
        # per-head accumulation of the output projection == concat-then-matmul
        proj = proj + jnp.dot(oh.reshape(R, dim_head), wout_ref[0, h],
                              preferred_element_type=jnp.float32)
    proj = proj + bout
    y2 = _leaky_relu(_layernorm(proj, aln_g, aln_b)) + x2     # (R, D)

    # -------- Sparse MoE of GCN experts (expert-stacked lane layout) ---------
    # flat lane index d = v*C + c ; expert-stacked lane index i = e*C + c.
    prob = jnp.dot(y2, ge_ref[0], preferred_element_type=jnp.float32) + bge  # (R, EC)
    # torch.argmax over experts (first max wins) for every (row, channel)
    best_val = prob[:, 0:C]
    best_idx = jnp.zeros((R, C), jnp.int32)
    for e in range(1, E):
        pe = prob[:, e * C:(e + 1) * C]
        upd = pe > best_val
        best_idx = jnp.where(upd, e, best_idx)
        best_val = jnp.where(upd, pe, best_val)
    onehot = jnp.concatenate([(best_idx == e).astype(jnp.float32)
                              for e in range(E)], axis=-1)    # (R, EC)

    # graph aggregation ONCE (commutes with the channel-wise routing mask).
    yA = jnp.dot(y2, ag_ref[...], preferred_element_type=jnp.float32)        # (R, D)
    w_exp = wstack_ref[0]                                     # (EC, EC) block-diag experts
    add_parts = []
    for u in range(V):                                        # block-diag over nodes
        yAu = yA[:, u * C:(u + 1) * C]                        # (R, C)
        zu = jnp.dot(yAu, tce_ref[...],
                     preferred_element_type=jnp.float32) * onehot            # (R, EC)
        sup = jnp.dot(zu, w_exp, preferred_element_type=jnp.float32) + bgcn  # (R, EC)
        add_parts.append(jnp.dot(sup * onehot, sec_ref[...],
                                 preferred_element_type=jnp.float32))        # (R, C)
    y2 = y2 + jnp.concatenate(add_parts, axis=-1)             # MoE residual

    # ------------- causal 3-tap conv over time -> LN -> LeakyReLU ------------
    w0 = conv_w_ref[l, 0]
    w1 = conv_w_ref[l, 1]
    w2 = conv_w_ref[l, 2]
    cb = conv_b_ref[l, 0]
    y3 = y2.reshape(Nb, Tp, D)
    z1 = jnp.zeros((Nb, 1, D), jnp.float32)
    ym1 = jnp.concatenate([z1, y3[:, :Tp - 1, :]], axis=1)    # y[t-1]
    ym2 = jnp.concatenate([z1, z1, y3[:, :Tp - 2, :]], axis=1)  # y[t-2]
    conv = w0 * ym2 + w1 * ym1 + w2 * y3 + cb
    x_new = _leaky_relu(_layernorm(conv, squ_g, squ_b))
    act_ref[...] = x_new

    # --------------------- cls pooling + final FC ----------------------------
    @pl.when(l == num_layers - 1)
    def _():
        cls_rows = x_new[:, 0, :]                             # (Nb, D)
        o_ref[0] = jnp.dot(cls_rows, fcw_ref[...],
                           preferred_element_type=jnp.float32) + fcb_ref[...]


# ------------------------------ params (JAX-native) -------------------------

def init_params(key, *, in_channels, num_points, time_window, num_layers,
                heads, dim_head, num_classes, num_experts):
    C, V = in_channels, num_points
    D = C * V
    inner = heads * dim_head
    keys = jax.random.split(key, 4 + num_layers)
    p = {
        "pos_embedding": jax.random.normal(keys[0], (1, time_window + 1, D), jnp.float32),
        "cls_token": jax.random.normal(keys[1], (1, 1, D), jnp.float32),
        "ln_g": jnp.ones((1, D), jnp.float32), "ln_b": jnp.zeros((1, D), jnp.float32),
        "fc_w": 0.1 * jax.random.normal(keys[2], (D, num_classes), jnp.float32),
        "fc_b": jnp.zeros((1, num_classes), jnp.float32),
        "A_lower": jax.random.uniform(keys[3], (V * (V - 1) // 2,), jnp.float32),
        "layers": [],
    }
    for l in range(num_layers):
        lk = jax.random.split(keys[4 + l], 6)
        p["layers"].append({
            "attn_wqkv": 0.1 * jax.random.normal(lk[0], (D, 3 * inner), jnp.float32),
            "attn_wout": 0.1 * jax.random.normal(lk[1], (inner, D), jnp.float32),
            "attn_bout": jnp.zeros((1, D), jnp.float32),
            "attn_ln_g": jnp.ones((1, D), jnp.float32),
            "attn_ln_b": jnp.zeros((1, D), jnp.float32),
            "gate_w": 0.5 * jax.random.normal(lk[2], (V, num_experts), jnp.float32),
            "gate_b": 0.1 * jax.random.normal(lk[3], (1, num_experts), jnp.float32),
            "gcn_w": 0.5 * jax.random.normal(lk[4], (num_experts, C, C), jnp.float32),
            "gcn_b": jnp.zeros((num_experts, C), jnp.float32),
            "conv_w": 0.5 * jax.random.normal(lk[5], (3,), jnp.float32),
            "conv_b": jnp.zeros((1,), jnp.float32),
            "squ_ln_g": jnp.ones((1, D), jnp.float32),
            "squ_ln_b": jnp.zeros((1, D), jnp.float32),
        })
    return p


# ------------------------------- forward wrapper ----------------------------

def make_forward(*, num_points, num_experts, heads, dim_head, batch_block=8):
    V = num_points
    E = num_experts
    inner = heads * dim_head

    @jax.jit
    def forward(params, x):
        N, T, Vx, C = x.shape
        D = Vx * C
        T1 = T + 1
        Tp = ((T1 + 7) // 8) * 8          # pad time to a sublane multiple
        EC = E * C
        K = params["fc_w"].shape[1]
        layers = params["layers"]
        L = len(layers)

        # ---- host-side XLA glue: cls token + pos-embed + first LayerNorm ----
        xf = jnp.concatenate(
            [jnp.broadcast_to(params["cls_token"], (N, 1, D)),
             x.reshape(N, T, D)], axis=1) + params["pos_embedding"][:, :T1]
        mu = jnp.mean(xf, axis=-1, keepdims=True)
        var = jnp.mean(jnp.square(xf - mu), axis=-1, keepdims=True)
        xf = (xf - mu) * lax.rsqrt(var + LN_EPS) * params["ln_g"] + params["ln_b"]

        # multi-sample blocking (Nb samples per grid step)
        Nb = max(1, min(batch_block, N))
        NB = -(-N // Nb)
        N_pad = NB * Nb
        xf = jnp.pad(xf, ((0, N_pad - N), (0, Tp - T1), (0, 0)))

        # learnable symmetric adjacency -> D^{-1/2} A D^{-1/2}
        xs, ys = jnp.tril_indices(V, -1)
        adj = jnp.zeros((V, V), jnp.float32).at[xs, ys].set(params["A_lower"])
        adj = adj + adj.T + jnp.eye(V, dtype=jnp.float32)
        d_inv_sqrt = 1.0 / jnp.sqrt(adj.sum(1))
        norm_a = d_inv_sqrt[:, None] * adj * d_inv_sqrt[None, :]

        eyeC = jnp.eye(C, dtype=jnp.float32)
        eyeE = jnp.eye(E, dtype=jnp.float32)
        AG = jnp.kron(norm_a.T, eyeC)                 # (D, D)   graph aggregation
        TCE = jnp.tile(eyeC, (1, E))                  # (C, EC)  tile chans across experts
        SEC = jnp.tile(eyeC, (E, 1))                  # (EC, C)  sum over experts

        stack = lambda key: jnp.stack([lp[key] for lp in layers], axis=0)
        wqkv = stack("attn_wqkv")                     # (L, D, 3*inner)

        def split_heads(w):                           # (L, D, inner) -> (L, H, D, dh)
            return w.reshape(L, D, heads, dim_head).transpose(0, 2, 1, 3)

        wq = split_heads(wqkv[:, :, 0:inner])
        wk = split_heads(wqkv[:, :, inner:2 * inner])
        wv = split_heads(wqkv[:, :, 2 * inner:3 * inner])
        wout = stack("attn_wout").reshape(L, heads, dim_head, D)   # (L, H, dh, D)

        lvec = jnp.stack([stack("attn_bout")[:, 0], stack("attn_ln_g")[:, 0],
                          stack("attn_ln_b")[:, 0], stack("squ_ln_g")[:, 0],
                          stack("squ_ln_b")[:, 0]], axis=1)        # (L, 5, D)

        GE = jnp.stack([jnp.kron(lp["gate_w"], eyeC) for lp in layers], 0)   # (L, D, EC)
        bge = jnp.stack([jnp.kron(lp["gate_b"], jnp.ones((1, C), jnp.float32))[0]
                         for lp in layers], 0)                               # (L, EC)
        bgcn = jnp.stack([lp["gcn_b"].reshape(EC) for lp in layers], 0)      # (L, EC)
        evec = jnp.stack([bge, bgcn], axis=1)                                # (L, 2, EC)
        Wstack = jnp.stack(
            [jnp.einsum("ef,ecj->ecfj", eyeE, lp["gcn_w"]).reshape(EC, EC)
             for lp in layers], 0)                                           # (L, EC, EC)

        conv_tap = jnp.stack([lp["conv_w"] for lp in layers], 0)             # (L, 3)
        conv_bias = jnp.stack([lp["conv_b"] for lp in layers], 0)            # (L, 1)

        kernel = functools.partial(
            moge_layer_kernel, num_layers=L, heads=heads, dim_head=dim_head,
            num_experts=E, num_points=V, seq_len=T1)

        def fixed(shape):
            n = len(shape)
            return pl.BlockSpec(tuple(shape), lambda i, l, _n=n: (0,) * _n)

        def per_layer(shape):
            n = len(shape)
            return pl.BlockSpec((1,) + tuple(shape),
                                lambda i, l, _n=n: (l,) + (0,) * _n)

        smem = pl.BlockSpec(memory_space=pltpu.MemorySpace.SMEM)

        out = pl.pallas_call(
            kernel,
            out_shape=jax.ShapeDtypeStruct((NB, Nb, K), jnp.float32),
            grid=(NB, L),
            in_specs=[
                smem, smem,
                pl.BlockSpec((Nb, Tp, D), lambda i, l: (i, 0, 0)),
                per_layer((heads, D, dim_head)),
                per_layer((heads, D, dim_head)),
                per_layer((heads, D, dim_head)),
                per_layer((heads, dim_head, D)),
                per_layer((5, D)),
                per_layer((D, EC)),
                per_layer((2, EC)),
                per_layer((EC, EC)),
                fixed((D, D)), fixed((C, EC)), fixed((EC, C)),
                fixed((D, K)), fixed((1, K)),
            ],
            out_specs=pl.BlockSpec((1, Nb, K), lambda i, l: (i, 0, 0)),
            scratch_shapes=[pltpu.VMEM((Nb, Tp, D), jnp.float32)],
            compiler_params=pltpu.CompilerParams(
                dimension_semantics=("parallel", "arbitrary")),
        )(conv_tap, conv_bias, xf, wq, wk, wv, wout, lvec,
          GE, evec, Wstack, AG, TCE, SEC, params["fc_w"], params["fc_b"])
        return out.reshape(N_pad, K)[:N]

    return forward


if __name__ == "__main__":
    # small config (module hard-codes V=5; residual path requires hidden == in)
    N = 2
    in_channels = hidden_channels = 4
    num_points = 5
    time_window = 8
    num_layers = 2
    heads = 2
    dim_head = 8
    num_classes = 3
    num_experts = 4

    key = jax.random.PRNGKey(0)
    pkey, xkey = jax.random.split(key)
    params = init_params(pkey, in_channels=in_channels, num_points=num_points,
                         time_window=time_window, num_layers=num_layers,
                         heads=heads, dim_head=dim_head, num_classes=num_classes,
                         num_experts=num_experts)
    x = jax.random.normal(xkey, (N, time_window, num_points, in_channels), jnp.float32)

    forward = make_forward(num_points=num_points, num_experts=num_experts,
                           heads=heads, dim_head=dim_head, batch_block=8)
    out = forward(params, x)
    out = jax.block_until_ready(out)
    assert out.shape == (N, num_classes)
    assert bool(jnp.all(jnp.isfinite(out)))
    print("KERNEL_OK")
</pallas_src>

<mosaic_0001>
module attributes {stable_mosaic.version = 11 : i64} {
  func.func @moge_layer_kernel(%arg0: i32, %arg1: i32, %arg2: memref<2x3xf32, #tpu.memory_space<smem>>, %arg3: memref<2x1xf32, #tpu.memory_space<smem>>, %arg4: memref<2x16x20xf32, #tpu.memory_space<vmem>>, %arg5: memref<1x2x20x8xf32, #tpu.memory_space<vmem>>, %arg6: memref<1x2x20x8xf32, #tpu.memory_space<vmem>>, %arg7: memref<1x2x20x8xf32, #tpu.memory_space<vmem>>, %arg8: memref<1x2x8x20xf32, #tpu.memory_space<vmem>>, %arg9: memref<1x5x20xf32, #tpu.memory_space<vmem>>, %arg10: memref<1x20x16xf32, #tpu.memory_space<vmem>>, %arg11: memref<1x2x16xf32, #tpu.memory_space<vmem>>, %arg12: memref<1x16x16xf32, #tpu.memory_space<vmem>>, %arg13: memref<20x20xf32, #tpu.memory_space<vmem>>, %arg14: memref<4x16xf32, #tpu.memory_space<vmem>>, %arg15: memref<16x4xf32, #tpu.memory_space<vmem>>, %arg16: memref<20x3xf32, #tpu.memory_space<vmem>>, %arg17: memref<1x3xf32, #tpu.memory_space<vmem>>, %arg18: memref<1x2x3xf32, #tpu.memory_space<vmem>>, %arg19: memref<2x16x20xf32, #tpu.memory_space<vmem>>) attributes {dimension_semantics = [#tpu.dimension_semantics<parallel>, #tpu.dimension_semantics<arbitrary>], iteration_bounds = array<i64: 1, 2>, scalar_prefetch = 0 : i64, scratch_operands = 1 : i64, tpu.core_type = #tpu.core_type<tc>, window_params = [{transform_indices = @transform_0, window_bounds = array<i64: 2, 3>}, {transform_indices = @transform_1, window_bounds = array<i64: 2, 1>}, {transform_indices = @transform_2, window_bounds = array<i64: 2, 16, 20>}, {transform_indices = @transform_3, window_bounds = array<i64: 1, 2, 20, 8>}, {transform_indices = @transform_4, window_bounds = array<i64: 1, 2, 20, 8>}, {transform_indices = @transform_5, window_bounds = array<i64: 1, 2, 20, 8>}, {transform_indices = @transform_6, window_bounds = array<i64: 1, 2, 8, 20>}, {transform_indices = @transform_7, window_bounds = array<i64: 1, 5, 20>}, {transform_indices = @transform_8, window_bounds = array<i64: 1, 20, 16>}, {transform_indices = @transform_9, window_bounds = array<i64: 1, 2, 16>}, {transform_indices = @transform_10, window_bounds = array<i64: 1, 16, 16>}, {pipeline_mode = #tpu.pipeline_mode<synchronous>, transform_indices = @transform_11, window_bounds = array<i64: 20, 20>}, {pipeline_mode = #tpu.pipeline_mode<synchronous>, transform_indices = @transform_12, window_bounds = array<i64: 4, 16>}, {pipeline_mode = #tpu.pipeline_mode<synchronous>, transform_indices = @transform_13, window_bounds = array<i64: 16, 4>}, {pipeline_mode = #tpu.pipeline_mode<synchronous>, transform_indices = @transform_14, window_bounds = array<i64: 20, 3>}, {pipeline_mode = #tpu.pipeline_mode<synchronous>, transform_indices = @transform_15, window_bounds = array<i64: 1, 3>}, {transform_indices = @transform_16, window_bounds = array<i64: 1, 2, 3>}]} {
    %c0_i32 = arith.constant 0 : i32
    %0 = arith.cmpi eq, %arg1, %c0_i32 : i32
    %1 = arith.extui %0 : i1 to i32
    %c0_i32_0 = arith.constant 0 : i32
    %2 = arith.cmpi ne, %1, %c0_i32_0 : i32
    scf.if %2 {
      %c0_133 = arith.constant 0 : index
      %c0_134 = arith.constant 0 : index
      %c0_135 = arith.constant 0 : index
      %271 = vector.load %arg4[%c0_133, %c0_134, %c0_135] : memref<2x16x20xf32, #tpu.memory_space<vmem>>, vector<2x16x20xf32>
      %c0_136 = arith.constant 0 : index
      %c0_137 = arith.constant 0 : index
      %c0_138 = arith.constant 0 : index
      %272 = vector.load %arg19[%c0_136, %c0_137, %c0_138] : memref<2x16x20xf32, #tpu.memory_space<vmem>>, vector<2x16x20xf32>
      tpu.vector_store %arg19[%c0_136, %c0_137, %c0_138], %271 {strides = array<i32>} : memref<2x16x20xf32, #tpu.memory_space<vmem>>, vector<2x16x20xf32>,
    } else {
    }
    %c0 = arith.constant 0 : index
    %c0_1 = arith.constant 0 : index
    %c0_2 = arith.constant 0 : index
    %3 = vector.load %arg19[%c0, %c0_1, %c0_2] : memref<2x16x20xf32, #tpu.memory_space<vmem>>, vector<2x16x20xf32>
    %4 = vector.shape_cast %3 : vector<2x16x20xf32> to vector<32x20xf32>
    %c0_3 = arith.constant 0 : index
    %c0_4 = arith.constant 0 : index
    %c0_5 = arith.constant 0 : index
    %5 = vector.load %arg9[%c0_3, %c0_4, %c0_5] : memref<1x5x20xf32, #tpu.memory_space<vmem>>, vector<1x5x20xf32>
    %6 = vector.shape_cast %5 : vector<1x5x20xf32> to vector<5x20xf32>
    %7 = vector.extract_strided_slice %6 {offsets = [0, 0], sizes = [1, 20], strides = [1, 1]} : vector<5x20xf32> to vector<1x20xf32>
    %8 = vector.extract_strided_slice %6 {offsets = [1, 0], sizes = [1, 20], strides = [1, 1]} : vector<5x20xf32> to vector<1x20xf32>
    %9 = vector.extract_strided_slice %6 {offsets = [2, 0], sizes = [1, 20], strides = [1, 1]} : vector<5x20xf32> to vector<1x20xf32>
    %10 = vector.extract_strided_slice %6 {offsets = [3, 0], sizes = [1, 20], strides = [1, 1]} : vector<5x20xf32> to vector<1x20xf32>
    %11 = vector.extract_strided_slice %6 {offsets = [4, 0], sizes = [1, 20], strides = [1, 1]} : vector<5x20xf32> to vector<1x20xf32>
    %c0_6 = arith.constant 0 : index
    %c0_7 = arith.constant 0 : index
    %c0_8 = arith.constant 0 : index
    %12 = vector.load %arg11[%c0_6, %c0_7, %c0_8] : memref<1x2x16xf32, #tpu.memory_space<vmem>>, vector<1x2x16xf32>
    %13 = vector.shape_cast %12 : vector<1x2x16xf32> to vector<2x16xf32>
    %14 = vector.extract_strided_slice %13 {offsets = [0, 0], sizes = [1, 16], strides = [1, 1]} : vector<2x16xf32> to vector<1x16xf32>
    %15 = vector.extract_strided_slice %13 {offsets = [1, 0], sizes = [1, 16], strides = [1, 1]} : vector<2x16xf32> to vector<1x16xf32>
    %16 = tpu.iota {dimensions = array<i32: 2>} : vector<1x1x16xi32>
    %c9_i32 = arith.constant 9 : i32
    %17 = vector.broadcast %c9_i32 : i32 to vector<1x1x16xi32>
    %18 = arith.cmpi slt, %16, %17 : vector<1x1x16xi32>
    %cst = arith.constant 0.000000e+00 : f32
    %19 = vector.broadcast %cst : f32 to vector<32x20xf32>
    %c0_9 = arith.constant 0 : index
    %c0_10 = arith.constant 0 : index
    %c0_11 = arith.constant 0 : index
    %c0_12 = arith.constant 0 : index
    %20 = vector.load %arg5[%c0_9, %c0_10, %c0_11, %c0_12] : memref<1x2x20x8xf32, #tpu.memory_space<vmem>>, vector<1x1x20x8xf32>
    %21 = vector.shape_cast %20 : vector<1x1x20x8xf32> to vector<20x8xf32>
    %cst_13 = arith.constant dense<0.000000e+00> : vector<32x8xf32>
    %22 = tpu.matmul %4, %21, %cst_13 {dimension_numbers = #tpu.dot_dimension_numbers<[1], [0], [0], [1], [0, 0, 1, 1], [], []>} : vector<32x20xf32>, vector<20x8xf32>, vector<32x8xf32> -> vector<32x8xf32>
    %c0_14 = arith.constant 0 : index
    %c0_15 = arith.constant 0 : index
    %c0_16 = arith.constant 0 : index
    %c0_17 = arith.constant 0 : index
    %23 = vector.load %arg6[%c0_14, %c0_15, %c0_16, %c0_17] : memref<1x2x20x8xf32, #tpu.memory_space<vmem>>, vector<1x1x20x8xf32>
    %24 = vector.shape_cast %23 : vector<1x1x20x8xf32> to vector<20x8xf32>
    %cst_18 = arith.constant dense<0.000000e+00> : vector<32x8xf32>
    %25 = tpu.matmul %4, %24, %cst_18 {dimension_numbers = #tpu.dot_dimension_numbers<[1], [0], [0], [1], [0, 0, 1, 1], [], []>} : vector<32x20xf32>, vector<20x8xf32>, vector<32x8xf32> -> vector<32x8xf32>
    %c0_19 = arith.constant 0 : index
    %c0_20 = arith.constant 0 : index
    %c0_21 = arith.constant 0 : index
    %c0_22 = arith.constant 0 : index
    %26 = vector.load %arg7[%c0_19, %c0_20, %c0_21, %c0_22] : memref<1x2x20x8xf32, #tpu.memory_space<vmem>>, vector<1x1x20x8xf32>
    %27 = vector.shape_cast %26 : vector<1x1x20x8xf32> to vector<20x8xf32>
    %cst_23 = arith.constant dense<0.000000e+00> : vector<32x8xf32>
    %28 = tpu.matmul %4, %27, %cst_23 {dimension_numbers = #tpu.dot_dimension_numbers<[1], [0], [0], [1], [0, 0, 1, 1], [], []>} : vector<32x20xf32>, vector<20x8xf32>, vector<32x8xf32> -> vector<32x8xf32>
    %29 = vector.shape_cast %22 : vector<32x8xf32> to vector<2x16x8xf32>
    %30 = vector.shape_cast %25 : vector<32x8xf32> to vector<2x16x8xf32>
    %31 = vector.shape_cast %28 : vector<32x8xf32> to vector<2x16x8xf32>
    %cst_24 = arith.constant dense<0.000000e+00> : vector<2x16x16xf32>
    %32 = tpu.matmul %29, %30, %cst_24 {dimension_numbers = #tpu.dot_dimension_numbers<[2], [2], [1], [1], [0, 0, 0, 1, 1, 1], [0], [0]>} : vector<2x16x8xf32>, vector<2x16x8xf32>, vector<2x16x16xf32> -> vector<2x16x16xf32>
    %cst_25 = arith.constant 0.353553385 : f32
    %33 = vector.broadcast %cst_25 : f32 to vector<2x16x16xf32>
    %34 = arith.mulf %32, %33 : vector<2x16x16xf32>
    %cst_26 = arith.constant -1.000000e+30 : f32
    %35 = vector.shape_cast %18 : vector<1x1x16xi1> to vector<1x1x16xi1>
    %36 = vector.broadcast %35 : vector<1x1x16xi1> to vector<2x16x16xi1>
    %37 = vector.broadcast %cst_26 : f32 to vector<2x16x16xf32>
    %38 = arith.select %36, %34, %37 : vector<2x16x16xi1>, vector<2x16x16xf32>
    %cst_27 = arith.constant dense<0xFF800000> : vector<2x16xf32>
    %39 = vector.multi_reduction <maximumf>, %38, %cst_27 [2] : vector<2x16x16xf32> to vector<2x16xf32>
    %40 = vector.shape_cast %39 : vector<2x16xf32> to vector<2x16x1xf32>
    %41 = vector.broadcast %40 : vector<2x16x1xf32> to vector<2x16x16xf32>
    %42 = arith.subf %38, %41 : vector<2x16x16xf32>
    %43 = math.exp %42 : vector<2x16x16xf32>
    %cst_28 = arith.constant dense<0.000000e+00> : vector<2x16xf32>
    %44 = vector.multi_reduction <add>, %43, %cst_28 [2] : vector<2x16x16xf32> to vector<2x16xf32>
    %45 = vector.shape_cast %44 : vector<2x16xf32> to vector<2x16x1xf32>
    %46 = tpu.reciprocal %45 {approx = true} : vector<2x16x1xf32> -> vector<2x16x1xf32>
    %47 = vector.broadcast %46 : vector<2x16x1xf32> to vector<2x16x16xf32>
    %48 = arith.mulf %43, %47 : vector<2x16x16xf32>
    %cst_29 = arith.constant dense<0.000000e+00> : vector<2x16x8xf32>
    %49 = tpu.matmul %48, %31, %cst_29 {dimension_numbers = #tpu.dot_dimension_numbers<[2], [1], [1], [2], [0, 0, 0, 1, 1, 2], [0], [0]>} : vector<2x16x16xf32>, vector<2x16x8xf32>, vector<2x16x8xf32> -> vector<2x16x8xf32>
    %50 = vector.shape_cast %49 : vector<2x16x8xf32> to vector<32x8xf32>
    %c0_30 = arith.constant 0 : index
    %c0_31 = arith.constant 0 : index
    %c0_32 = arith.constant 0 : index
    %c0_33 = arith.constant 0 : index
    %51 = vector.load %arg8[%c0_30, %c0_31, %c0_32, %c0_33] : memref<1x2x8x20xf32, #tpu.memory_space<vmem>>, vector<1x1x8x20xf32>
    %52 = vector.shape_cast %51 : vector<1x1x8x20xf32> to vector<8x20xf32>
    %cst_34 = arith.constant dense<0.000000e+00> : vector<32x20xf32>
    %53 = tpu.matmul %50, %52, %cst_34 {dimension_numbers = #tpu.dot_dimension_numbers<[1], [0], [0], [1], [0, 0, 1, 1], [], []>} : vector<32x8xf32>, vector<8x20xf32>, vector<32x20xf32> -> vector<32x20xf32>
    %54 = arith.addf %19, %53 : vector<32x20xf32>
    %c0_35 = arith.constant 0 : index
    %c1 = arith.constant 1 : index
    %c0_36 = arith.constant 0 : index
    %c0_37 = arith.constant 0 : index
    %55 = vector.load %arg5[%c0_35, %c1, %c0_36, %c0_37] : memref<1x2x20x8xf32, #tpu.memory_space<vmem>>, vector<1x1x20x8xf32>
    %56 = vector.shape_cast %55 : vector<1x1x20x8xf32> to vector<20x8xf32>
    %cst_38 = arith.constant dense<0.000000e+00> : vector<32x8xf32>
    %57 = tpu.matmul %4, %56, %cst_38 {dimension_numbers = #tpu.dot_dimension_numbers<[1], [0], [0], [1], [0, 0, 1, 1], [], []>} : vector<32x20xf32>, vector<20x8xf32>, vector<32x8xf32> -> vector<32x8xf32>
    %c0_39 = arith.constant 0 : index
    %c1_40 = arith.constant 1 : index
    %c0_41 = arith.constant 0 : index
    %c0_42 = arith.constant 0 : index
    %58 = vector.load %arg6[%c0_39, %c1_40, %c0_41, %c0_42] : memref<1x2x20x8xf32, #tpu.memory_space<vmem>>, vector<1x1x20x8xf32>
    %59 = vector.shape_cast %58 : vector<1x1x20x8xf32> to vector<20x8xf32>
    %cst_43 = arith.constant dense<0.000000e+00> : vector<32x8xf32>
    %60 = tpu.matmul %4, %59, %cst_43 {dimension_numbers = #tpu.dot_dimension_numbers<[1], [0], [0], [1], [0, 0, 1, 1], [], []>} : vector<32x20xf32>, vector<20x8xf32>, vector<32x8xf32> -> vector<32x8xf32>
    %c0_44 = arith.constant 0 : index
    %c1_45 = arith.constant 1 : index
    %c0_46 = arith.constant 0 : index
    %c0_47 = arith.constant 0 : index
    %61 = vector.load %arg7[%c0_44, %c1_45, %c0_46, %c0_47] : memref<1x2x20x8xf32, #tpu.memory_space<vmem>>, vector<1x1x20x8xf32>
    %62 = vector.shape_cast %61 : vector<1x1x20x8xf32> to vector<20x8xf32>
    %cst_48 = arith.constant dense<0.000000e+00> : vector<32x8xf32>
    %63 = tpu.matmul %4, %62, %cst_48 {dimension_numbers = #tpu.dot_dimension_numbers<[1], [0], [0], [1], [0, 0, 1, 1], [], []>} : vector<32x20xf32>, vector<20x8xf32>, vector<32x8xf32> -> vector<32x8xf32>
    %64 = vector.shape_cast %57 : vector<32x8xf32> to vector<2x16x8xf32>
    %65 = vector.shape_cast %60 : vector<32x8xf32> to vector<2x16x8xf32>
    %66 = vector.shape_cast %63 : vector<32x8xf32> to vector<2x16x8xf32>
    %cst_49 = arith.constant dense<0.000000e+00> : vector<2x16x16xf32>
    %67 = tpu.matmul %64, %65, %cst_49 {dimension_numbers = #tpu.dot_dimension_numbers<[2], [2], [1], [1], [0, 0, 0, 1, 1, 1], [0], [0]>} : vector<2x16x8xf32>, vector<2x16x8xf32>, vector<2x16x16xf32> -> vector<2x16x16xf32>
    %cst_50 = arith.constant 0.353553385 : f32
    %68 = vector.broadcast %cst_50 : f32 to vector<2x16x16xf32>
    %69 = arith.mulf %67, %68 : vector<2x16x16xf32>
    %cst_51 = arith.constant -1.000000e+30 : f32
    %70 = vector.shape_cast %18 : vector<1x1x16xi1> to vector<1x1x16xi1>
    %71 = vector.broadcast %70 : vector<1x1x16xi1> to vector<2x16x16xi1>
    %72 = vector.broadcast %cst_51 : f32 to vector<2x16x16xf32>
    %73 = arith.select %71, %69, %72 : vector<2x16x16xi1>, vector<2x16x16xf32>
    %cst_52 = arith.constant dense<0xFF800000> : vector<2x16xf32>
    %74 = vector.multi_reduction <maximumf>, %73, %cst_52 [2] : vector<2x16x16xf32> to vector<2x16xf32>
    %75 = vector.shape_cast %74 : vector<2x16xf32> to vector<2x16x1xf32>
    %76 = vector.broadcast %75 : vector<2x16x1xf32> to vector<2x16x16xf32>
    %77 = arith.subf %73, %76 : vector<2x16x16xf32>
    %78 = math.exp %77 : vector<2x16x16xf32>
    %cst_53 = arith.constant dense<0.000000e+00> : vector<2x16xf32>
    %79 = vector.multi_reduction <add>, %78, %cst_53 [2] : vector<2x16x16xf32> to vector<2x16xf32>
    %80 = vector.shape_cast %79 : vector<2x16xf32> to vector<2x16x1xf32>
    %81 = tpu.reciprocal %80 {approx = true} : vector<2x16x1xf32> -> vector<2x16x1xf32>
    %82 = vector.broadcast %81 : vector<2x16x1xf32> to vector<2x16x16xf32>
    %83 = arith.mulf %78, %82 : vector<2x16x16xf32>
    %cst_54 = arith.constant dense<0.000000e+00> : vector<2x16x8xf32>
    %84 = tpu.matmul %83, %66, %cst_54 {dimension_numbers = #tpu.dot_dimension_numbers<[2], [1], [1], [2], [0, 0, 0, 1, 1, 2], [0], [0]>} : vector<2x16x16xf32>, vector<2x16x8xf32>, vector<2x16x8xf32> -> vector<2x16x8xf32>
    %85 = vector.shape_cast %84 : vector<2x16x8xf32> to vector<32x8xf32>
    %c0_55 = arith.constant 0 : index
    %c1_56 = arith.constant 1 : index
    %c0_57 = arith.constant 0 : index
    %c0_58 = arith.constant 0 : index
    %86 = vector.load %arg8[%c0_55, %c1_56, %c0_57, %c0_58] : memref<1x2x8x20xf32, #tpu.memory_space<vmem>>, vector<1x1x8x20xf32>
    %87 = vector.shape_cast %86 : vector<1x1x8x20xf32> to vector<8x20xf32>
    %cst_59 = arith.constant dense<0.000000e+00> : vector<32x20xf32>
    %88 = tpu.matmul %85, %87, %cst_59 {dimension_numbers = #tpu.dot_dimension_numbers<[1], [0], [0], [1], [0, 0, 1, 1], [], []>} : vector<32x8xf32>, vector<8x20xf32>, vector<32x20xf32> -> vector<32x20xf32>
    %89 = arith.addf %54, %88 : vector<32x20xf32>
    %90 = vector.broadcast %7 : vector<1x20xf32> to vector<32x20xf32>
    %91 = arith.addf %89, %90 : vector<32x20xf32>
    %cst_60 = arith.constant dense<0.000000e+00> : vector<32xf32>
    %92 = vector.multi_reduction <add>, %91, %cst_60 [1] : vector<32x20xf32> to vector<32xf32>
    %93 = vector.shape_cast %92 : vector<32xf32> to vector<32x1xf32>
    %cst_61 = arith.constant 2.000000e+01 : f32
    %94 = vector.broadcast %cst_61 : f32 to vector<32x1xf32>
    %95 = arith.divf %93, %94 : vector<32x1xf32>
    %96 = vector.broadcast %95 : vector<32x1xf32> to vector<32x20xf32>
    %97 = arith.subf %91, %96 : vector<32x20xf32>
    %98 = arith.mulf %97, %97 : vector<32x20xf32>
    %cst_62 = arith.constant dense<0.000000e+00> : vector<32xf32>
    %99 = vector.multi_reduction <add>, %98, %cst_62 [1] : vector<32x20xf32> to vector<32xf32>
    %100 = vector.shape_cast %99 : vector<32xf32> to vector<32x1xf32>
    %cst_63 = arith.constant 2.000000e+01 : f32
    %101 = vector.broadcast %cst_63 : f32 to vector<32x1xf32>
    %102 = arith.divf %100, %101 : vector<32x1xf32>
    %103 = vector.broadcast %95 : vector<32x1xf32> to vector<32x20xf32>
    %104 = arith.subf %91, %103 : vector<32x20xf32>
    %cst_64 = arith.constant 9.99999974E-6 : f32
    %105 = vector.broadcast %cst_64 : f32 to vector<32x1xf32>
    %106 = arith.addf %102, %105 : vector<32x1xf32>
    %107 = math.rsqrt %106 : vector<32x1xf32>
    %108 = vector.broadcast %107 : vector<32x1xf32> to vector<32x20xf32>
    %109 = arith.mulf %104, %108 : vector<32x20xf32>
    %110 = vector.broadcast %8 : vector<1x20xf32> to vector<32x20xf32>
    %111 = arith.mulf %109, %110 : vector<32x20xf32>
    %112 = vector.broadcast %9 : vector<1x20xf32> to vector<32x20xf32>
    %113 = arith.addf %111, %112 : vector<32x20xf32>
    %cst_65 = arith.constant 0.000000e+00 : f32
    %114 = vector.broadcast %cst_65 : f32 to vector<32x20xf32>
    %115 = arith.cmpf ogt, %113, %114 : vector<32x20xf32>
    %cst_66 = arith.constant 0.00999999977 : f32
    %116 = vector.broadcast %cst_66 : f32 to vector<32x20xf32>
    %117 = arith.mulf %116, %113 : vector<32x20xf32>
    %118 = arith.select %115, %113, %117 : vector<32x20xi1>, vector<32x20xf32>
    %119 = arith.addf %118, %4 : vector<32x20xf32>
    %c0_67 = arith.constant 0 : index
    %c0_68 = arith.constant 0 : index
    %c0_69 = arith.constant 0 : index
    %120 = vector.load %arg10[%c0_67, %c0_68, %c0_69] : memref<1x20x16xf32, #tpu.memory_space<vmem>>, vector<1x20x16xf32>
    %121 = vector.shape_cast %120 : vector<1x20x16xf32> to vector<20x16xf32>
    %cst_70 = arith.constant dense<0.000000e+00> : vector<32x16xf32>
    %122 = tpu.matmul %119, %121, %cst_70 {dimension_numbers = #tpu.dot_dimension_numbers<[1], [0], [0], [1], [0, 0, 1, 1], [], []>} : vector<32x20xf32>, vector<20x16xf32>, vector<32x16xf32> -> vector<32x16xf32>
    %123 = vector.broadcast %14 : vector<1x16xf32> to vector<32x16xf32>
    %124 = arith.addf %122, %123 : vector<32x16xf32>
    %125 = vector.extract_strided_slice %124 {offsets = [0, 0], sizes = [32, 4], strides = [1, 1]} : vector<32x16xf32> to vector<32x4xf32>
    %c0_i32_71 = arith.constant 0 : i32
    %126 = vector.broadcast %c0_i32_71 : i32 to vector<32x4xi32>
    %127 = vector.extract_strided_slice %124 {offsets = [0, 4], sizes = [32, 4], strides = [1, 1]} : vector<32x16xf32> to vector<32x4xf32>
    %128 = arith.cmpf ogt, %127, %125 : vector<32x4xf32>
    %c1_i32 = arith.constant 1 : i32
    %129 = vector.broadcast %c1_i32 : i32 to vector<32x4xi32>
    %130 = arith.select %128, %129, %126 : vector<32x4xi1>, vector<32x4xi32>
    %131 = arith.select %128, %127, %125 : vector<32x4xi1>, vector<32x4xf32>
    %132 = vector.extract_strided_slice %124 {offsets = [0, 8], sizes = [32, 4], strides = [1, 1]} : vector<32x16xf32> to vector<32x4xf32>
    %133 = arith.cmpf ogt, %132, %131 : vector<32x4xf32>
    %c2_i32 = arith.constant 2 : i32
    %134 = vector.broadcast %c2_i32 : i32 to vector<32x4xi32>
    %135 = arith.select %133, %134, %130 : vector<32x4xi1>, vector<32x4xi32>
    %136 = arith.select %133, %132, %131 : vector<32x4xi1>, vector<32x4xf32>
    %137 = vector.extract_strided_slice %124 {offsets = [0, 12], sizes = [32, 4], strides = [1, 1]} : vector<32x16xf32> to vector<32x4xf32>
    %138 = arith.cmpf ogt, %137, %136 : vector<32x4xf32>
    %c3_i32 = arith.constant 3 : i32
    %139 = vector.broadcast %c3_i32 : i32 to vector<32x4xi32>
    %140 = arith.select %138, %139, %135 : vector<32x4xi1>, vector<32x4xi32>
    %c0_i32_72 = arith.constant 0 : i32
    %141 = vector.broadcast %c0_i32_72 : i32 to vector<32x4xi32>
    %142 = arith.cmpi eq, %140, %141 : vector<32x4xi32>
    %143 = arith.extui %142 : vector<32x4xi1> to vector<32x4xi32>
    %144 = arith.sitofp %143 : vector<32x4xi32> to vector<32x4xf32>
    %c1_i32_73 = arith.constant 1 : i32
    %145 = vector.broadcast %c1_i32_73 : i32 to vector<32x4xi32>
    %146 = arith.cmpi eq, %140, %145 : vector<32x4xi32>
    %147 = arith.extui %146 : vector<32x4xi1> to vector<32x4xi32>
    %148 = arith.sitofp %147 : vector<32x4xi32> to vector<32x4xf32>
    %c2_i32_74 = arith.constant 2 : i32
    %149 = vector.broadcast %c2_i32_74 : i32 to vector<32x4xi32>
    %150 = arith.cmpi eq, %140, %149 : vector<32x4xi32>
    %151 = arith.extui %150 : vector<32x4xi1> to vector<32x4xi32>
    %152 = arith.sitofp %151 : vector<32x4xi32> to vector<32x4xf32>
    %c3_i32_75 = arith.constant 3 : i32
    %153 = vector.broadcast %c3_i32_75 : i32 to vector<32x4xi32>
    %154 = arith.cmpi eq, %140, %153 : vector<32x4xi32>
    %155 = arith.extui %154 : vector<32x4xi1> to vector<32x4xi32>
    %156 = arith.sitofp %155 : vector<32x4xi32> to vector<32x4xf32>
    %157 = tpu.concatenate %144, %148, %152, %156 in 1 : vector<32x4xf32>, vector<32x4xf32>, vector<32x4xf32>, vector<32x4xf32> -> vector<32x16xf32>
    %c0_76 = arith.constant 0 : index
    %c0_77 = arith.constant 0 : index
    %158 = vector.load %arg13[%c0_76, %c0_77] : memref<20x20xf32, #tpu.memory_space<vmem>>, vector<20x20xf32>
    %cst_78 = arith.constant dense<0.000000e+00> : vector<32x20xf32>
    %159 = tpu.matmul %119, %158, %cst_78 {dimension_numbers = #tpu.dot_dimension_numbers<[1], [0], [0], [1], [0, 0, 1, 1], [], []>} : vector<32x20xf32>, vector<20x20xf32>, vector<32x20xf32> -> vector<32x20xf32>
    %c0_79 = arith.constant 0 : index
    %c0_80 = arith.constant 0 : index
    %c0_81 = arith.constant 0 : index
    %160 = vector.load %arg12[%c0_79, %c0_80, %c0_81] : memref<1x16x16xf32, #tpu.memory_space<vmem>>, vector<1x16x16xf32>
    %161 = vector.shape_cast %160 : vector<1x16x16xf32> to vector<16x16xf32>
    %162 = vector.extract_strided_slice %159 {offsets = [0, 0], sizes = [32, 4], strides = [1, 1]} : vector<32x20xf32> to vector<32x4xf32>
    %c0_82 = arith.constant 0 : index
    %c0_83 = arith.constant 0 : index
    %163 = vector.load %arg14[%c0_82, %c0_83] : memref<4x16xf32, #tpu.memory_space<vmem>>, vector<4x16xf32>
    %cst_84 = arith.constant dense<0.000000e+00> : vector<32x16xf32>
    %164 = tpu.matmul %162, %163, %cst_84 {dimension_numbers = #tpu.dot_dimension_numbers<[1], [0], [0], [1], [0, 0, 1, 1], [], []>} : vector<32x4xf32>, vector<4x16xf32>, vector<32x16xf32> -> vector<32x16xf32>
    %165 = arith.mulf %164, %157 : vector<32x16xf32>
    %cst_85 = arith.constant dense<0.000000e+00> : vector<32x16xf32>
    %166 = tpu.matmul %165, %161, %cst_85 {dimension_numbers = #tpu.dot_dimension_numbers<[1], [0], [0], [1], [0, 0, 1, 1], [], []>} : vector<32x16xf32>, vector<16x16xf32>, vector<32x16xf32> -> vector<32x16xf32>
    %167 = vector.broadcast %15 : vector<1x16xf32> to vector<32x16xf32>
    %168 = arith.addf %166, %167 : vector<32x16xf32>
    %169 = arith.mulf %168, %157 : vector<32x16xf32>
    %c0_86 = arith.constant 0 : index
    %c0_87 = arith.constant 0 : index
    %170 = vector.load %arg15[%c0_86, %c0_87] : memref<16x4xf32, #tpu.memory_space<vmem>>, vector<16x4xf32>
    %cst_88 = arith.constant dense<0.000000e+00> : vector<32x4xf32>
    %171 = tpu.matmul %169, %170, %cst_88 {dimension_numbers = #tpu.dot_dimension_numbers<[1], [0], [0], [1], [0, 0, 1, 1], [], []>} : vector<32x16xf32>, vector<16x4xf32>, vector<32x4xf32> -> vector<32x4xf32>
    %172 = vector.extract_strided_slice %159 {offsets = [0, 4], sizes = [32, 4], strides = [1, 1]} : vector<32x20xf32> to vector<32x4xf32>
    %c0_89 = arith.constant 0 : index
    %c0_90 = arith.constant 0 : index
    %173 = vector.load %arg14[%c0_89, %c0_90] : memref<4x16xf32, #tpu.memory_space<vmem>>, vector<4x16xf32>
    %cst_91 = arith.constant dense<0.000000e+00> : vector<32x16xf32>
    %174 = tpu.matmul %172, %173, %cst_91 {dimension_numbers = #tpu.dot_dimension_numbers<[1], [0], [0], [1], [0, 0, 1, 1], [], []>} : vector<32x4xf32>, vector<4x16xf32>, vector<32x16xf32> -> vector<32x16xf32>
    %175 = arith.mulf %174, %157 : vector<32x16xf32>
    %cst_92 = arith.constant dense<0.000000e+00> : vector<32x16xf32>
    %176 = tpu.matmul %175, %161, %cst_92 {dimension_numbers = #tpu.dot_dimension_numbers<[1], [0], [0], [1], [0, 0, 1, 1], [], []>} : vector<32x16xf32>, vector<16x16xf32>, vector<32x16xf32> -> vector<32x16xf32>
    %177 = vector.broadcast %15 : vector<1x16xf32> to vector<32x16xf32>
    %178 = arith.addf %176, %177 : vector<32x16xf32>
    %179 = arith.mulf %178, %157 : vector<32x16xf32>
    %c0_93 = arith.constant 0 : index
    %c0_94 = arith.constant 0 : index
    %180 = vector.load %arg15[%c0_93, %c0_94] : memref<16x4xf32, #tpu.memory_space<vmem>>, vector<16x4xf32>
    %cst_95 = arith.constant dense<0.000000e+00> : vector<32x4xf32>
    %181 = tpu.matmul %179, %180, %cst_95 {dimension_numbers = #tpu.dot_dimension_numbers<[1], [0], [0], [1], [0, 0, 1, 1], [], []>} : vector<32x16xf32>, vector<16x4xf32>, vector<32x4xf32> -> vector<32x4xf32>
    %182 = vector.extract_strided_slice %159 {offsets = [0, 8], sizes = [32, 4], strides = [1, 1]} : vector<32x20xf32> to vector<32x4xf32>
    %c0_96 = arith.constant 0 : index
    %c0_97 = arith.constant 0 : index
    %183 = vector.load %arg14[%c0_96, %c0_97] : memref<4x16xf32, #tpu.memory_space<vmem>>, vector<4x16xf32>
    %cst_98 = arith.constant dense<0.000000e+00> : vector<32x16xf32>
    %184 = tpu.matmul %182, %183, %cst_98 {dimension_numbers = #tpu.dot_dimension_numbers<[1], [0], [0], [1], [0, 0, 1, 1], [], []>} : vector<32x4xf32>, vector<4x16xf32>, vector<32x16xf32> -> vector<32x16xf32>
    %185 = arith.mulf %184, %157 : vector<32x16xf32>
    %cst_99 = arith.constant dense<0.000000e+00> : vector<32x16xf32>
    %186 = tpu.matmul %185, %161, %cst_99 {dimension_numbers = #tpu.dot_dimension_numbers<[1], [0], [0], [1], [0, 0, 1, 1], [], []>} : vector<32x16xf32>, vector<16x16xf32>, vector<32x16xf32> -> vector<32x16xf32>
    %187 = vector.broadcast %15 : vector<1x16xf32> to vector<32x16xf32>
    %188 = arith.addf %186, %187 : vector<32x16xf32>
    %189 = arith.mulf %188, %157 : vector<32x16xf32>
    %c0_100 = arith.constant 0 : index
    %c0_101 = arith.constant 0 : index
    %190 = vector.load %arg15[%c0_100, %c0_101] : memref<16x4xf32, #tpu.memory_space<vmem>>, vector<16x4xf32>
    %cst_102 = arith.constant dense<0.000000e+00> : vector<32x4xf32>
    %191 = tpu.matmul %189, %190, %cst_102 {dimension_numbers = #tpu.dot_dimension_numbers<[1], [0], [0], [1], [0, 0, 1, 1], [], []>} : vector<32x16xf32>, vector<16x4xf32>, vector<32x4xf32> -> vector<32x4xf32>
    %192 = vector.extract_strided_slice %159 {offsets = [0, 12], sizes = [32, 4], strides = [1, 1]} : vector<32x20xf32> to vector<32x4xf32>
    %c0_103 = arith.constant 0 : index
    %c0_104 = arith.constant 0 : index
    %193 = vector.load %arg14[%c0_103, %c0_104] : memref<4x16xf32, #tpu.memory_space<vmem>>, vector<4x16xf32>
    %cst_105 = arith.constant dense<0.000000e+00> : vector<32x16xf32>
    %194 = tpu.matmul %192, %193, %cst_105 {dimension_numbers = #tpu.dot_dimension_numbers<[1], [0], [0], [1], [0, 0, 1, 1], [], []>} : vector<32x4xf32>, vector<4x16xf32>, vector<32x16xf32> -> vector<32x16xf32>
    %195 = arith.mulf %194, %157 : vector<32x16xf32>
    %cst_106 = arith.constant dense<0.000000e+00> : vector<32x16xf32>
    %196 = tpu.matmul %195, %161, %cst_106 {dimension_numbers = #tpu.dot_dimension_numbers<[1], [0], [0], [1], [0, 0, 1, 1], [], []>} : vector<32x16xf32>, vector<16x16xf32>, vector<32x16xf32> -> vector<32x16xf32>
    %197 = vector.broadcast %15 : vector<1x16xf32> to vector<32x16xf32>
    %198 = arith.addf %196, %197 : vector<32x16xf32>
    %199 = arith.mulf %198, %157 : vector<32x16xf32>
    %c0_107 = arith.constant 0 : index
    %c0_108 = arith.constant 0 : index
    %200 = vector.load %arg15[%c0_107, %c0_108] : memref<16x4xf32, #tpu.memory_space<vmem>>, vector<16x4xf32>
    %cst_109 = arith.constant dense<0.000000e+00> : vector<32x4xf32>
    %201 = tpu.matmul %199, %200, %cst_109 {dimension_numbers = #tpu.dot_dimension_numbers<[1], [0], [0], [1], [0, 0, 1, 1], [], []>} : vector<32x16xf32>, vector<16x4xf32>, vector<32x4xf32> -> vector<32x4xf32>
    %202 = vector.extract_strided_slice %159 {offsets = [0, 16], sizes = [32, 4], strides = [1, 1]} : vector<32x20xf32> to vector<32x4xf32>
    %c0_110 = arith.constant 0 : index
    %c0_111 = arith.constant 0 : index
    %203 = vector.load %arg14[%c0_110, %c0_111] : memref<4x16xf32, #tpu.memory_space<vmem>>, vector<4x16xf32>
    %cst_112 = arith.constant dense<0.000000e+00> : vector<32x16xf32>
    %204 = tpu.matmul %202, %203, %cst_112 {dimension_numbers = #tpu.dot_dimension_numbers<[1], [0], [0], [1], [0, 0, 1, 1], [], []>} : vector<32x4xf32>, vector<4x16xf32>, vector<32x16xf32> -> vector<32x16xf32>
    %205 = arith.mulf %204, %157 : vector<32x16xf32>
    %cst_113 = arith.constant dense<0.000000e+00> : vector<32x16xf32>
    %206 = tpu.matmul %205, %161, %cst_113 {dimension_numbers = #tpu.dot_dimension_numbers<[1], [0], [0], [1], [0, 0, 1, 1], [], []>} : vector<32x16xf32>, vector<16x16xf32>, vector<32x16xf32> -> vector<32x16xf32>
    %207 = vector.broadcast %15 : vector<1x16xf32> to vector<32x16xf32>
    %208 = arith.addf %206, %207 : vector<32x16xf32>
    %209 = arith.mulf %208, %157 : vector<32x16xf32>
    %c0_114 = arith.constant 0 : index
    %c0_115 = arith.constant 0 : index
    %210 = vector.load %arg15[%c0_114, %c0_115] : memref<16x4xf32, #tpu.memory_space<vmem>>, vector<16x4xf32>
    %cst_116 = arith.constant dense<0.000000e+00> : vector<32x4xf32>
    %211 = tpu.matmul %209, %210, %cst_116 {dimension_numbers = #tpu.dot_dimension_numbers<[1], [0], [0], [1], [0, 0, 1, 1], [], []>} : vector<32x16xf32>, vector<16x4xf32>, vector<32x4xf32> -> vector<32x4xf32>
    %212 = tpu.concatenate %171, %181, %191, %201, %211 in 1 : vector<32x4xf32>, vector<32x4xf32>, vector<32x4xf32>, vector<32x4xf32>, vector<32x4xf32> -> vector<32x20xf32>
    %213 = arith.addf %119, %212 : vector<32x20xf32>
    %214 = arith.index_cast %arg1 : i32 to index
    %c0_117 = arith.constant 0 : index
    %215 = memref.load %arg2[%214, %c0_117] : memref<2x3xf32, #tpu.memory_space<smem>>
    %216 = arith.index_cast %arg1 : i32 to index
    %c1_118 = arith.constant 1 : index
    %217 = memref.load %arg2[%216, %c1_118] : memref<2x3xf32, #tpu.memory_space<smem>>
    %218 = arith.index_cast %arg1 : i32 to index
    %c2 = arith.constant 2 : index
    %219 = memref.load %arg2[%218, %c2] : memref<2x3xf32, #tpu.memory_space<smem>>
    %220 = arith.index_cast %arg1 : i32 to index
    %c0_119 = arith.constant 0 : index
    %221 = memref.load %arg3[%220, %c0_119] : memref<2x1xf32, #tpu.memory_space<smem>>
    %222 = vector.shape_cast %213 : vector<32x20xf32> to vector<2x16x20xf32>
    %cst_120 = arith.constant 0.000000e+00 : f32
    %223 = vector.broadcast %cst_120 : f32 to vector<2x1x20xf32>
    %224 = vector.extract_strided_slice %222 {offsets = [0, 0, 0], sizes = [2, 15, 20], strides = [1, 1, 1]} : vector<2x16x20xf32> to vector<2x15x20xf32>
    %225 = tpu.concatenate %223, %224 in 1 : vector<2x1x20xf32>, vector<2x15x20xf32> -> vector<2x16x20xf32>
    %226 = vector.extract_strided_slice %222 {offsets = [0, 0, 0], sizes = [2, 14, 20], strides = [1, 1, 1]} : vector<2x16x20xf32> to vector<2x14x20xf32>
    %227 = tpu.concatenate %223, %223, %226 in 1 : vector<2x1x20xf32>, vector<2x1x20xf32>, vector<2x14x20xf32> -> vector<2x16x20xf32>
    %228 = vector.broadcast %215 : f32 to vector<2x16x20xf32>
    %229 = arith.mulf %228, %227 : vector<2x16x20xf32>
    %230 = vector.broadcast %217 : f32 to vector<2x16x20xf32>
    %231 = arith.mulf %230, %225 : vector<2x16x20xf32>
    %232 = arith.addf %229, %231 : vector<2x16x20xf32>
    %233 = vector.broadcast %219 : f32 to vector<2x16x20xf32>
    %234 = arith.mulf %233, %222 : vector<2x16x20xf32>
    %235 = arith.addf %232, %234 : vector<2x16x20xf32>
    %236 = vector.broadcast %221 : f32 to vector<2x16x20xf32>
    %237 = arith.addf %235, %236 : vector<2x16x20xf32>
    %cst_121 = arith.constant dense<0.000000e+00> : vector<2x16xf32>
    %238 = vector.multi_reduction <add>, %237, %cst_121 [2] : vector<2x16x20xf32> to vector<2x16xf32>
    %239 = vector.shape_cast %238 : vector<2x16xf32> to vector<2x16x1xf32>
    %cst_122 = arith.constant 2.000000e+01 : f32
    %240 = vector.broadcast %cst_122 : f32 to vector<2x16x1xf32>
    %241 = arith.divf %239, %240 : vector<2x16x1xf32>
    %242 = vector.broadcast %241 : vector<2x16x1xf32> to vector<2x16x20xf32>
    %243 = arith.subf %237, %242 : vector<2x16x20xf32>
    %244 = arith.mulf %243, %243 : vector<2x16x20xf32>
    %cst_123 = arith.constant dense<0.000000e+00> : vector<2x16xf32>
    %245 = vector.multi_reduction <add>, %244, %cst_123 [2] : vector<2x16x20xf32> to vector<2x16xf32>
    %246 = vector.shape_cast %245 : vector<2x16xf32> to vector<2x16x1xf32>
    %cst_124 = arith.constant 2.000000e+01 : f32
    %247 = vector.broadcast %cst_124 : f32 to vector<2x16x1xf32>
    %248 = arith.divf %246, %247 : vector<2x16x1xf32>
    %249 = vector.broadcast %241 : vector<2x16x1xf32> to vector<2x16x20xf32>
    %250 = arith.subf %237, %249 : vector<2x16x20xf32>
    %cst_125 = arith.constant 9.99999974E-6 : f32
    %251 = vector.broadcast %cst_125 : f32 to vector<2x16x1xf32>
    %252 = arith.addf %248, %251 : vector<2x16x1xf32>
    %253 = math.rsqrt %252 : vector<2x16x1xf32>
    %254 = vector.broadcast %253 : vector<2x16x1xf32> to vector<2x16x20xf32>
    %255 = arith.mulf %250, %254 : vector<2x16x20xf32>
    %256 = vector.shape_cast %10 : vector<1x20xf32> to vector<1x1x20xf32>
    %257 = vector.broadcast %256 : vector<1x1x20xf32> to vector<2x16x20xf32>
    %258 = arith.mulf %255, %257 : vector<2x16x20xf32>
    %259 = vector.shape_cast %11 : vector<1x20xf32> to vector<1x1x20xf32>
    %260 = vector.broadcast %259 : vector<1x1x20xf32> to vector<2x16x20xf32>
    %261 = arith.addf %258, %260 : vector<2x16x20xf32>
    %cst_126 = arith.constant 0.000000e+00 : f32
    %262 = vector.broadcast %cst_126 : f32 to vector<2x16x20xf32>
    %263 = arith.cmpf ogt, %261, %262 : vector<2x16x20xf32>
    %cst_127 = arith.constant 0.00999999977 : f32
    %264 = vector.broadcast %cst_127 : f32 to vector<2x16x20xf32>
    %265 = arith.mulf %264, %261 : vector<2x16x20xf32>
    %266 = arith.select %263, %261, %265 : vector<2x16x20xi1>, vector<2x16x20xf32>
    %c0_128 = arith.constant 0 : index
    %c0_129 = arith.constant 0 : index
    %c0_130 = arith.constant 0 : index
    %267 = vector.load %arg19[%c0_128, %c0_129, %c0_130] : memref<2x16x20xf32, #tpu.memory_space<vmem>>, vector<2x16x20xf32>
    tpu.vector_store %arg19[%c0_128, %c0_129, %c0_130], %266 {strides = array<i32>} : memref<2x16x20xf32, #tpu.memory_space<vmem>>, vector<2x16x20xf32>,
    %c1_i32_131 = arith.constant 1 : i32
    %268 = arith.cmpi eq, %arg1, %c1_i32_131 : i32
    %269 = arith.extui %268 : i1 to i32
    %c0_i32_132 = arith.constant 0 : i32
    %270 = arith.cmpi ne, %269, %c0_i32_132 : i32
    scf.if %270 {
      %271 = vector.extract_strided_slice %266 {offsets = [0, 0, 0], sizes = [2, 1, 20], strides = [1, 1, 1]} : vector<2x16x20xf32> to vector<2x1x20xf32>
      %272 = vector.shape_cast %271 : vector<2x1x20xf32> to vector<2x20xf32>
      %c0_133 = arith.constant 0 : index
      %c0_134 = arith.constant 0 : index
      %273 = vector.load %arg16[%c0_133, %c0_134] : memref<20x3xf32, #tpu.memory_space<vmem>>, vector<20x3xf32>
      %cst_135 = arith.constant dense<0.000000e+00> : vector<2x3xf32>
      %274 = tpu.matmul %272, %273, %cst_135 {dimension_numbers = #tpu.dot_dimension_numbers<[1], [0], [0], [1], [0, 0, 1, 1], [], []>} : vector<2x20xf32>, vector<20x3xf32>, vector<2x3xf32> -> vector<2x3xf32>
      %c0_136 = arith.constant 0 : index
      %c0_137 = arith.constant 0 : index
      %275 = vector.load %arg17[%c0_136, %c0_137] : memref<1x3xf32, #tpu.memory_space<vmem>>, vector<1x3xf32>
      %276 = vector.broadcast %275 : vector<1x3xf32> to vector<2x3xf32>
      %277 = arith.addf %274, %276 : vector<2x3xf32>
      %c0_138 = arith.constant 0 : index
      %c0_139 = arith.constant 0 : index
      %c0_140 = arith.constant 0 : index
      %278 = vector.load %arg18[%c0_138, %c0_139, %c0_140] : memref<1x2x3xf32, #tpu.memory_space<vmem>>, vector<1x2x3xf32>
      %279 = vector.shape_cast %278 : vector<1x2x3xf32> to vector<2x3xf32>
      %280 = vector.shape_cast %277 : vector<2x3xf32> to vector<1x2x3xf32>
      tpu.vector_store %arg18[%c0_138, %c0_139, %c0_140], %280 {strides = array<i32>} : memref<1x2x3xf32, #tpu.memory_space<vmem>>, vector<1x2x3xf32>,
    } else {
    }
    return
  }
  func.func @transform_0(%arg0: i32, %arg1: i32) -> (i32, i32) {
    %c0_i32 = arith.constant 0 : i32
    %c0_i32_0 = arith.constant 0 : i32
    %c0_i32_1 = arith.constant 0 : i32
    return %c0_i32, %c0_i32_0 : i32, i32
  }
  func.func @transform_1(%arg0: i32, %arg1: i32) -> (i32, i32) {
    %c0_i32 = arith.constant 0 : i32
    %c0_i32_0 = arith.constant 0 : i32
    %c0_i32_1 = arith.constant 0 : i32
    return %c0_i32, %c0_i32_0 : i32, i32
  }
  func.func @transform_2(%arg0: i32, %arg1: i32) -> (i32, i32, i32) {
    %c0_i32 = arith.constant 0 : i32
    %c0_i32_0 = arith.constant 0 : i32
    %c0_i32_1 = arith.constant 0 : i32
    return %arg0, %c0_i32, %c0_i32_0 : i32, i32, i32
  }
  func.func @transform_3(%arg0: i32, %arg1: i32) -> (i32, i32, i32, i32) {
    %c0_i32 = arith.constant 0 : i32
    %c0_i32_0 = arith.constant 0 : i32
    %c0_i32_1 = arith.constant 0 : i32
    %c0_i32_2 = arith.constant 0 : i32
    return %arg1, %c0_i32, %c0_i32_0, %c0_i32_1 : i32, i32, i32, i32
  }
  func.func @transform_4(%arg0: i32, %arg1: i32) -> (i32, i32, i32, i32) {
    %c0_i32 = arith.constant 0 : i32
    %c0_i32_0 = arith.constant 0 : i32
    %c0_i32_1 = arith.constant 0 : i32
    %c0_i32_2 = arith.constant 0 : i32
    return %arg1, %c0_i32, %c0_i32_0, %c0_i32_1 : i32, i32, i32, i32
  }
  func.func @transform_5(%arg0: i32, %arg1: i32) -> (i32, i32, i32, i32) {
    %c0_i32 = arith.constant 0 : i32
    %c0_i32_0 = arith.constant 0 : i32
    %c0_i32_1 = arith.constant 0 : i32
    %c0_i32_2 = arith.constant 0 : i32
    return %arg1, %c0_i32, %c0_i32_0, %c0_i32_1 : i32, i32, i32, i32
  }
  func.func @transform_6(%arg0: i32, %arg1: i32) -> (i32, i32, i32, i32) {
    %c0_i32 = arith.constant 0 : i32
    %c0_i32_0 = arith.constant 0 : i32
    %c0_i32_1 = arith.constant 0 : i32
    %c0_i32_2 = arith.constant 0 : i32
    return %arg1, %c0_i32, %c0_i32_0, %c0_i32_1 : i32, i32, i32, i32
  }
  func.func @transform_7(%arg0: i32, %arg1: i32) -> (i32, i32, i32) {
    %c0_i32 = arith.constant 0 : i32
    %c0_i32_0 = arith.constant 0 : i32
    %c0_i32_1 = arith.constant 0 : i32
    return %arg1, %c0_i32, %c0_i32_0 : i32, i32, i32
  }
  func.func @transform_8(%arg0: i32, %arg1: i32) -> (i32, i32, i32) {
    %c0_i32 = arith.constant 0 : i32
    %c0_i32_0 = arith.constant 0 : i32
    %c0_i32_1 = arith.constant 0 : i32
    return %arg1, %c0_i32, %c0_i32_0 : i32, i32, i32
  }
  func.func @transform_9(%arg0: i32, %arg1: i32) -> (i32, i32, i32) {
    %c0_i32 = arith.constant 0 : i32
    %c0_i32_0 = arith.constant 0 : i32
    %c0_i32_1 = arith.constant 0 : i32
    return %arg1, %c0_i32, %c0_i32_0 : i32, i32, i32
  }
  func.func @transform_10(%arg0: i32, %arg1: i32) -> (i32, i32, i32) {
    %c0_i32 = arith.constant 0 : i32
    %c0_i32_0 = arith.constant 0 : i32
    %c0_i32_1 = arith.constant 0 : i32
    return %arg1, %c0_i32, %c0_i32_0 : i32, i32, i32
  }
  func.func @transform_11(%arg0: i32, %arg1: i32) -> (i32, i32) {
    %c0_i32 = arith.constant 0 : i32
    %c0_i32_0 = arith.constant 0 : i32
    %c0_i32_1 = arith.constant 0 : i32
    return %c0_i32, %c0_i32_0 : i32, i32
  }
  func.func @transform_12(%arg0: i32, %arg1: i32) -> (i32, i32) {
    %c0_i32 = arith.constant 0 : i32
    %c0_i32_0 = arith.constant 0 : i32
    %c0_i32_1 = arith.constant 0 : i32
    return %c0_i32, %c0_i32_0 : i32, i32
  }
  func.func @transform_13(%arg0: i32, %arg1: i32) -> (i32, i32) {
    %c0_i32 = arith.constant 0 : i32
    %c0_i32_0 = arith.constant 0 : i32
    %c0_i32_1 = arith.constant 0 : i32
    return %c0_i32, %c0_i32_0 : i32, i32
  }
  func.func @transform_14(%arg0: i32, %arg1: i32) -> (i32, i32) {
    %c0_i32 = arith.constant 0 : i32
    %c0_i32_0 = arith.constant 0 : i32
    %c0_i32_1 = arith.constant 0 : i32
    return %c0_i32, %c0_i32_0 : i32, i32
  }
  func.func @transform_15(%arg0: i32, %arg1: i32) -> (i32, i32) {
    %c0_i32 = arith.constant 0 : i32
    %c0_i32_0 = arith.constant 0 : i32
    %c0_i32_1 = arith.constant 0 : i32
    return %c0_i32, %c0_i32_0 : i32, i32
  }
  func.func @transform_16(%arg0: i32, %arg1: i32) -> (i32, i32, i32) {
    %c0_i32 = arith.constant 0 : i32
    %c0_i32_0 = arith.constant 0 : i32
    %c0_i32_1 = arith.constant 0 : i32
    return %arg0, %c0_i32, %c0_i32_0 : i32, i32, i32
  }
}

</mosaic_0001>

<bundles_post_ra>
// kernel: tile.14
= control target key start
LH: loop header
LB: loop body
LE: loop exit
PB: predicated region body
PF: predicated region fallthrough
CT: control target
= control target key end

     0   :  { %vm21_vm0 = vcmask 31744   ;;  %s56_s14 = smov 4   ;;  %s57_s15 = smov 8   ;;  %vm27_vm1 = vcmask 130144   ;;  %vm33_vm2 = vcmask 97344   ;;  %vm39_vm3 = vcmask 64544   ;;  %s83_s0 = inlined_call_operand.vmem [shape: f32[4,4,4], index: 0, kind: input, shape index: {}]   ;;  %s84_s1 = inlined_call_operand.vmem [shape: f32[4,16], index: 1, kind: output, shape index: {}]  }
   0x1   :  { %v49_v0 = vld [vmem:[%s83_s0 + $0xc] sm:$0xf]  ;;  %v50_v1 = vld [vmem:[%s83_s0 + $0x8] sm:$0xf]  ;;  %v51_v2 = vld [vmem:[%s83_s0 + $0x4] sm:$0xf] }
   0x2   :  { %8 = vst [vmem:[#allocation1 + $0x18] sm:$0xf] %v49_v0  ;;  %13 = vst [vmem:[#allocation1 + $0x10] sm:$0xf] %v50_v1  ;;  %v18_v3 = vld [vmem:[%s83_s0] sm:$0xf] }
   0x3   :  { %17 = vst [vmem:[#allocation1 + $0x8] sm:$0xf] %v51_v2  ;;  %19 = vst [vmem:[#allocation1] sm:$0xf] %v18_v3  ;;  %s55_s0 = smov 12  }
   0xa   :  { %v24_v4 = vld [vmem:[#allocation1 + $0x3] ss:$8 sm:$0xf]   ;;  %v36_v5 = vld [vmem:[#allocation1 + $0x1] ss:$8 sm:$0xf]  }
   0xb   :  { %25 = vrot.lane.b32.xlu0 %v24_v4, %s55_s0  ;;  %v20_v6 = vld [vmem:[#allocation1] ss:$8 sm:$0xf]   ;;  %v30_v7 = vld [vmem:[#allocation1 + $0x2] ss:$8 sm:$0xf]   ;;  %37 = vrot.lane.b32.xlu1 %v36_v5, %s56_s14 }
   0xc   :  { %22 = vst.msk [vmem:[#allocation0] sm:$0xf] %vm21_vm0, %v20_v6  }
   0xf   :  { %31 = vrot.lane.b32.xlu0 %v30_v7, %s57_s15 }
  0x7d   :  { %v26_v8 = vpop.permute.xlu0 %25   ;;  %v38_v9 = vpop.permute.xlu1 %37  }
  0x7e   :  { %28 = vst.msk [vmem:[#allocation0] sm:$0xf] %vm27_vm1, %v26_v8  }
  0x81   :  { %v32_v10 = vpop.permute.xlu0 %31  }
  0x82   :  { %34 = vst.msk [vmem:[#allocation0] sm:$0xf] %vm33_vm2, %v32_v10  }
  0x83   :  { %40 = vst.msk [vmem:[#allocation0] sm:$0xf] %vm39_vm3, %v38_v9  }
  0x8a   :  { %v44_v11 = vld [vmem:[#allocation0] sm:$0xf] }
  0x8b   :  { %46 = vst [vmem:[%s84_s1] sm:$0xf] %v44_v11 }

// kernel: forward.1
= control target key start
LH: loop header
LB: loop body
LE: loop exit
PB: predicated region body
PF: predicated region fallthrough
CT: control target
= control target key end

     0   :  { %s6802_s0 = inlined_call_operand.vmem [shape: f32[2,3], index: 0, kind: input, shape index: {}]   ;;  %s6803_s1 = inlined_call_operand.vmem [shape: f32[2,1], index: 1, kind: input, shape index: {}]   ;;  %s6804_s2 = inlined_call_operand.vmem [shape: f32[2,16,20], index: 2, kind: input, shape index: {}]   ;;  %s6805_s3 = inlined_call_operand.vmem [shape: f32[2,2,20,8], index: 3, kind: input, shape index: {}]   ;;  %s6806_s4 = inlined_call_operand.vmem [shape: f32[2,2,20,8], index: 4, kind: input, shape index: {}]   ;;  %s6807_s5 = inlined_call_operand.vmem [shape: f32[2,2,20,8], index: 5, kind: input, shape index: {}]   ;;  %s6808_s6 = inlined_call_operand.vmem [shape: f32[2,2,8,20], index: 6, kind: input, shape index: {}]   ;;  %s6809_s7 = inlined_call_operand.vmem [shape: f32[2,5,20], index: 7, kind: input, shape index: {}]   ;;  %s6810_s8 = inlined_call_operand.vmem [shape: f32[2,20,16], index: 8, kind: input, shape index: {}]   ;;  %s6811_s9 = inlined_call_operand.vmem [shape: f32[2,2,16], index: 9, kind: input, shape index: {}]   ;;  %s6812_s10 = inlined_call_operand.vmem [shape: f32[2,16,16], index: 10, kind: input, shape index: {}]   ;;  %s6813_s11 = inlined_call_operand.vmem [shape: f32[20,20], index: 11, kind: input, shape index: {}]   ;;  %s6814_s12 = inlined_call_operand.vmem [shape: f32[4,16], index: 12, kind: input, shape index: {}]   ;;  %s6815_s13 = inlined_call_operand.vmem [shape: f32[16,4], index: 13, kind: input, shape index: {}]   ;;  %s6816_s14 = inlined_call_operand.vmem [shape: f32[20,3], index: 14, kind: input, shape index: {}]   ;;  %s6817_s15 = inlined_call_operand.vmem [shape: f32[1,3], index: 15, kind: input, shape index: {}]   ;;  %s6818_s16 = inlined_call_operand.hbm [shape: f32[1,2,3], index: 16, kind: output, shape index: {}]  }
   0x1   :  { %6827 = sst [smem:[#allocation15_spill]] %s6802_s0 }
   0x2   :  { %6828 = sst [smem:[#allocation16_spill]] %s6803_s1 }
   0x3   :  { %6829 = sst [smem:[#allocation17_spill]] %s6805_s3 }
   0x4   :  { %6830 = sst [smem:[#allocation18_spill]] %s6806_s4 }
   0x5   :  { %6831 = sst [smem:[#allocation19_spill]] %s6808_s6 }
   0x6   :  { %6832 = sst [smem:[#allocation20_spill]] %s6816_s14 }
   0x7   :  { %6833 = sst [smem:[#allocation21_spill]] %s6817_s15 }
   0x8   :  { %6834 = sst [smem:[#allocation22_spill]] %s6818_s16 }
   0x9   :  { %21 = vsyncpa [#allocation5], 0 }
   0xa   :  { %22 = vsyncpa [#allocation7], 0 }
   0xb   :  { %23 = vsyncpa [#allocation4], 0  ;;  %s5959_s21 = smov 0   ;;  %s5961_s22 = smov 0  }
   0xc   :  { %s5963_s23 = smov 0  }
   0xd LB: > { %6835 = sst [smem:[#allocation12_spill]] %s5852_s22  ;;  %s6819_s24 = sadd.s32 4294967295, %s5856_s23   ;;  %s5856_s23 = sphi %s5963_s23, %s29_s23   ;;  %s5852_s22 = sphi %s5961_s22, %s6858_s22   ;;  %s5848_s21 = sphi %s5959_s21, %s6857_s21  }
   0xe   : > { %6836 = sst [smem:[#allocation13_spill]] %s5856_s23  ;;  %s38_s25 = sadd.s32 1, %s5852_s22 }
   0xf   : > { %p39_p0 = scmp.ge.s32.totalorder %s38_s25, 2  ;;  %p4803_p1 = scmp.ge.s32.totalorder %s5856_s23, 1 }
  0x10   : > { %p453_p2 = scmp.lt.s32.totalorder %s5856_s23, 3  ;;  %p5986_p4 = scmp.eq.s32.totalorder %s6819_s24, 0 }
  0x11   : > { %s6860_s25 = smov (%p39_p0, %s38_s25), 0  ;;  %s6840_s30 = sld [smem:[#allocation15_spill]] }
  0x12   : > { %6837 = sst [smem:[#allocation14_spill]] %s6860_s25  ;;  %p5980_p3 = pnand %p4803_p1, %p453_p2 }
  0x13   : > { %s6839_s27 = scalar_select %p5986_p4, 1, 0 }
  0x14   : > { %s6838_s26 = scalar_select %p5980_p3, 1, 0 }
  0x15   : > { %p5635_p5 = pneg %p5980_p3  ;;  %s6841_s1 = sld [smem:[#allocation16_spill]] }
  0x17   : > { %s466_s0 = sshll.u32 %s6840_s30, 4  ;;  %p6000_p6 = pnand %p5986_p4, %p5635_p5  ;;  %s467_s0 = int_to_ptr.vmem [resolvable:$true] %s466_s0 }
  0x18   : > { %s5766_s24 = scalar_lea.vmem %s467_s0, 32  ;;  %p5774_p11 = scmp.lt.s32.totalorder %s467_s0, %s467_s0 }
  0x19   : > { %p5767_p7 = scmp.ne.s32.totalorder %s467_s0, %s5766_s24  ;;  %p5768_p8 = pneg %p6000_p6 }
  0x1a   : > { %p5775_p12 = scmp.lt.s32.totalorder %s5766_s24, %s5766_s24 }
  0x1b   : > { %s477_s19 = sshll.u32 %s6841_s1, 4  ;;  %p5769_p9 = pnand %p5768_p8, %p5767_p7  ;;  %s478_s19 = int_to_ptr.vmem [resolvable:$true] %s477_s19 }
  0x1c   : > { %p5776_p13 = por %p5775_p12, %p5774_p11 }
  0x1d   : > { %p5770_p10 = pneg %p5769_p9 }
  0x1f   : > { %p5777_p0 = pnand %p5776_p13, %p5770_p10 }
  0x21   : > { %5780 = shalt.err (!%p5777_p0)
}
  0x22   : > { %s5858_s28 = smov [#allocation3]   ;;  %s5781_s29 = scalar_lea.vmem %s478_s19, 32 }
  0x23   : > { %5638 = dma.vmem_to_smem (!%p6000_p6), %s467_s0, 32, %s5858_s28, [#allocation5]  }
  0x24   : > { %p5782_p1 = scmp.ne.s32.totalorder %s478_s19, %s5781_s29  ;;  %p5789_p4 = scmp.lt.s32.totalorder %s478_s19, %s478_s19 }
  0x25   : > { %p5790_p3 = scmp.lt.s32.totalorder %s5781_s29, %s5781_s29 }
  0x26   : > { %p5784_p2 = pnand %p5782_p1, %p5768_p8 }
  0x27   : > { %p5791_p7 = por %p5790_p3, %p5789_p4 }
  0x28   : > { %p5785_p5 = pneg %p5784_p2 }
  0x2a   : > { %p5792_p9 = pnand %p5791_p7, %p5785_p5 }
  0x2c   : > { %5795 = shalt.err (!%p5792_p9)
}
  0x2d   : > { %s5859_s30 = smov [#allocation6]   ;;  %p6843_p10 = scmp.ne.s32.totalorder %s6838_s26, 0 }
  0x2e   : > { %5641 = dma.vmem_to_smem (!%p6000_p6), %s478_s19, 32, %s5859_s30, [#allocation7]  }
  0x2f   : > { %577 = sbr.rel (%p6843_p10) target bundleno = 5109 (0x13f5), region = 84  ;;  %p6844_p11 = scmp.ne.s32.totalorder (!%p6843_p10), %s6839_s27, 0 }
  0x36   : > { %5835 = dma.done.wait (%p6844_p11), [#allocation5], 32  }
  0x37   : > { %5837 = vsyncadd (%p6844_p11), [#allocation5], 4294967264 }
  0x38   : > { %5839 = dma.done.wait (%p6844_p11), [#allocation7], 32  }
  0x39   : > { %5841 = vsyncadd (%p6844_p11), [#allocation7], 4294967264 }
  0x3a   : > { %587 = sfence }
  0x3b   : > { %p673_p3 = scmp.lt.s32.totalorder %s5848_s21, 1  ;;  %s6845_s6 = sld [smem:[#allocation19_spill]] }
  0x3c   : > { %s6846_s3 = sld [smem:[#allocation17_spill]]  ;;  %s6847_s4 = sld [smem:[#allocation18_spill]] }
  0x3d   : > { %s674_s24 = scalar_select %p673_p3, %s5848_s21, 1 }
  0x3e   : > { %p4821_p4 = scmp.ne.s32.totalorder %s5848_s21, 0 }
  0x3f   : > { %s5621_s0 = smul.u32 48, %s674_s24  ;;  %s4994_s26 = sshll.u32 %s674_s24, 4  ;;  %v715_v0 = vld [vmem:[%s6804_s2] sm:$0xff] (!%p4821_p4)  ;;  %vm719_vm0 = vcmask (!%p4821_p4), 162816   ;;  %v716_v1 = vld [vmem:[%s6804_s2 + $0x8] sm:$0xff] (!%p4821_p4)  ;;  %v717_v2 = vld [vmem:[%s6804_s2 + $0x10] sm:$0xff] (!%p4821_p4) }
  0x40   : > { %s4816_s20 = sshll.u32 %s674_s24, 3  ;;  %s4818_s14 = sshll.u32 %s674_s24, 1  ;;  %720 = vst.msk [vmem:[#allocation2] sm:$0xff] (!%p4821_p4), %vm719_vm0, %v715_v0  ;;  %721 = vst.msk [vmem:[#allocation2 + $0x8] sm:$0xff] (!%p4821_p4), %vm719_vm0, %v716_v1  ;;  %v718_v3 = vld [vmem:[%s6804_s2 + $0x18] sm:$0xff] (!%p4821_p4) }
  0x41   : > { %s6025_s19 = scalar_lea.vmem %s6845_s6, %s4994_s26  ;;  %s6040_s23 = scalar_lea.vmem %s6807_s5, %s5621_s0  ;;  %722 = vst.msk [vmem:[#allocation2 + $0x10] sm:$0xff] (!%p4821_p4), %vm719_vm0, %v717_v2  ;;  %723 = vst.msk [vmem:[#allocation2 + $0x18] sm:$0xff] (!%p4821_p4), %vm719_vm0, %v718_v3 }
  0x42   : > { %s6030_s30 = scalar_lea.vmem %s6846_s3, %s5621_s0  ;;  %s6035_s25 = scalar_lea.vmem %s6847_s4, %s5621_s0 }
  0x43   : > { %s6045_s18 = scalar_lea.vmem %s6809_s7, %s4816_s20  ;;  %s5622_s6 = smul.u32 24, %s674_s24 }
  0x44   : > { %s6050_s3 = scalar_lea.vmem %s6811_s9, %s4818_s14  ;;  %s6055_s4 = scalar_lea.vmem %s6812_s10, %s4994_s26 }
  0x45   : > { %s6060_s0 = scalar_lea.vmem %s6810_s8, %s5622_s6  ;;  %714 = sbr.rel (%p4821_p4) target bundleno = 76 (0x4c), region = 96 }
  0x4c PF: > { %v838_v4 = vld [vmem:[%s6035_s25] sm:$0xff]  ;;  %v839_v5 = vld [vmem:[%s6035_s25 + $0x8] sm:$0xff]  ;;  %vm736_vm1 = vcmask 162816   ;;  %vm749_vm2 = vcmask 1043456   ;;  %v840_v9 = vld [vmem:[%s6035_s25 + $0x10] sm:$0xf]  ;;  %v730_v37 = vlaneseq }
  0x4d   : > { %v5504_v6 = vpack.c.bf16 %v839_v5, %v838_v4  ;;  %v6077_v7 = vld [vmem:[#allocation2] sm:$0xff]  ;;  %v734_v10 = vld [vmem:[%s6030_s30 + $0x8] sm:$0xff]  ;;  %v735_v12 = vld [vmem:[%s6030_s30 + $0x10] sm:$0xf]  ;;  %vm1020_vm3 = vcmask 64512   ;;  %vm1205_vm6 = vcmask 130048  }
  0x4e   : > { %v733_v8 = vld [vmem:[%s6030_s30] sm:$0xff]  ;;  %5201 = vmatprep.mubr.msk.f32.mxu1 %vm736_vm1, %v6077_v7  ;;  %5189 = vmatprep.mubr.msk.f32.mxu0 %vm736_vm1, %v6077_v7  ;;  %v930_v14 = vld [vmem:[%s6040_s23 + $0x8] sm:$0xff]  ;;  %v6092_v16 = vld [vmem:[#allocation2 + $0x10] sm:$0xff]  ;;  %v6146_v38 = vand.u32 127, %v730_v37  ;;  %s5860_s16 = smov 4   ;;  %vm2665_vm11 = vcmask 31744  }
  0x4f   : > { %5505 = vmatprep.subr.bf16.mxu1 %v5504_v6  ;;  %v5500_v11 = vpack.c.bf16 %v734_v10, %v733_v8  ;;  %v929_v13 = vld [vmem:[%s6040_s23] sm:$0xff]  ;;  %v6090_v15 = vld [vmem:[#allocation2 + $0x8] sm:$0xff]  ;;  %v6100_v18 = vld [vmem:[#allocation2 + $0x18] sm:$0xff]  ;;  %s5864_s22 = smov 116   ;;  %s5867_s17 = smov 8  }
  0x50   : > { %5507 = vmatpush3.bf16.msra.mxu1 %v5504_v6  ;;  %v5508_v17 = vpack.c.bf16 %v930_v14, %v929_v13  ;;  %v931_v19 = vld [vmem:[%s6040_s23 + $0x10] sm:$0xf]  ;;  %vm6124_vm4 = vmpackc.low %vm1020_vm3, %vm1020_vm3  ;;  %vm732_vm5 = vcmp.lt.s32.totalorder %v6146_v38, 9  ;;  %v4850_v13 = vld [vmem:[%s6030_s30 + $0x20] sm:$0xff]  ;;  %s5868_s26 = smov 12   ;;  %s5869_s6 = smov 16  }
  0x51   : > { %5199 = vmatprep.subr.msk.mxu1 %vm749_vm2, %v840_v9  ;;  %5501 = vmatprep.subr.bf16.mxu0 %v5500_v11  ;;  %s4985_s28 = sshll.u32 %s5848_s21, 7  ;;  %p4986_p6 = scmp.ne.s32.totalorder %s5848_s21, 1 }
  0x52   : > { %5503 = vmatpush3.bf16.msra.mxu0 %v5500_v11  ;;  %s6709_s29 = sld [smem:[#allocation6 + %s4985_s28]] }
  0x53   : > { %5187 = vmatprep.subr.msk.mxu0 %vm749_vm2, %v735_v12  ;;  %s6851_s24 = sld [smem:[#allocation21_spill]] (!%p4986_p6) }
  0x54   : > { %5200 = vmatpush3.msk.msra.mxu1 %vm749_vm2, %v840_v9 }
  0x55   : > { %5202 = vmatmul.mubr.msk.f32.vlgmr.msra.gmra.mrb[0].mxu1 %vm736_vm1, %v6090_v15 }
  0x56   : > { %5204 = vmatprep.mubr.msk.f32.mxu1 %vm736_vm1, %v6092_v16  ;;  %5188 = vmatpush3.msk.msra.mxu0 %vm749_vm2, %v735_v12  ;;  %v4849_v12 = vld [vmem:[%s6030_s30 + $0x18] sm:$0xff] }
  0x57   : > { %5190 = vmatmul.mubr.msk.f32.vlgmr.msra.gmra.mrb[0].mxu0 %vm736_vm1, %v6090_v15  ;;  %5509 = vmatprep.subr.bf16.mxu0 %v5508_v17  ;;  %v5532_v14 = vpack.c.bf16 %v4850_v13, %v4849_v12 }
  0x58   : > { %5192 = vmatprep.mubr.msk.f32.mxu0 %vm736_vm1, %v6092_v16  ;;  %5511 = vmatpush3.bf16.msra.mxu0 %v5508_v17  ;;  %v4851_v17 = vld [vmem:[%s6030_s30 + $0x28] sm:$0xf]  ;;  %s6690_s30 = sld [smem:[#allocation3 + %s4985_s28]] }
  0x59   : > { %5205 = vmatmul.mubr.msk.f32.gmra.mrb[2].mxu1 %vm736_vm1, %v6100_v18  ;;  %5211 = vmatprep.subr.msk.mxu0 %vm749_vm2, %v931_v19 }
  0x5b   : > { %5193 = vmatmul.mubr.msk.f32.gmra.mrb[2].mxu0 %vm736_vm1, %v6100_v18 }
  0x5c   : > { %5213 = vmatprep.mubr.msk.f32.mxu0 %vm736_vm1, %v6077_v7  ;;  %5212 = vmatpush3.msk.msra.mxu0 %vm749_vm2, %v931_v19 }
  0x5f   : > { %5214 = vmatmul.mubr.msk.f32.vlgmr.msra.gmra.mrb[4].mxu0 %vm736_vm1, %v6090_v15 }
  0x60   : > { %5216 = vmatprep.mubr.msk.f32.mxu0 %vm736_vm1, %v6092_v16 }
  0x63   : > { %5217 = vmatmul.mubr.msk.f32.gmra.mrb[6].mxu0 %vm736_vm1, %v6100_v18 }
 0x128   : > { %v5203_v20 = vpop.f32.mrb[0].mxu1 }
 0x129   : > { %v910_v21 = vpop.f32.mrb[1].mxu1 }
 0x12a   : > { %v5512_v23 = vpack.c.bf16 %v5203_v20, %v910_v21  ;;  %v5191_v24 = vpop.f32.mrb[0].mxu0 }
 0x12b   : > { %v819_v25 = vpop.f32.mrb[1].mxu0 }
 0x12c   : > { %v5206_v26 = vpop.f32.mrb[2].mxu1  ;;  %5514 = vmatprep.subr.msk.bf16.mxu1 %vm6124_vm4, %v5512_v23  ;;  %5223 = vmatprep.mubr.msk.f32.mxu1 %vm1020_vm3, %v819_v25 }
 0x12d   : > { %v920_v27 = vpop.f32.mrb[3].mxu1  ;;  %5517 = vmatpush3.bf16.xpose.msk.msra.mxu1 %vm6124_vm4, %v5512_v23 }
 0x12e   : > { %v5518_v28 = vpack.c.bf16 %v5206_v26, %v920_v27  ;;  %v5194_v29 = vpop.f32.mrb[2].mxu0  ;;  %v4857_v26 = vld [vmem:[%s6035_s25 + $0x18] sm:$0xff]  ;;  %v4858_v27 = vld [vmem:[%s6035_s25 + $0x20] sm:$0xff] }
 0x12f   : > { %v829_v30 = vpop.f32.mrb[3].mxu0 }
 0x130   : > { %5520 = vmatprep.subr.msk.bf16.mxu0 %vm6124_vm4, %v5518_v28  ;;  %5230 = vmatprep.mubr.msk.f32.mxu0 %vm1020_vm3, %v829_v30 }
 0x131   : > { %5523 = vmatpush3.bf16.xpose.msk.msra.mxu0 %vm6124_vm4, %v5518_v28 }
 0x132   : > { %v5215_v31 = vpop.f32.mrb[4].mxu0  ;;  %5533 = vmatprep.subr.bf16.mxu0 %v5532_v14 }
 0x133   : > { %v1001_v32 = vpop.f32.mrb[5].mxu0 }
 0x134   : > { %5224 = vmatmul.mubr.msk.f32.vlgmr.msra.gmra.mrb[4].mxu1 %vm1020_vm3, %v5191_v24  ;;  %v5524_v33 = vpack.c.bf16 %v5215_v31, %v1001_v32  ;;  %v5536_v31 = vpack.c.bf16 %v4858_v27, %v4857_v26 }
 0x136   : > { %5525 = vmatprep.subr.bf16.mxu1 %v5524_v33  ;;  %v5218_v34 = vpop.f32.mrb[6].mxu0 }
 0x137   : > { %5527 = vmatpush3.bf16.msra.mxu1 %v5524_v33  ;;  %v1011_v35 = vpop.f32.mrb[7].mxu0 }
 0x138   : > { %5231 = vmatmul.mubr.msk.f32.vlgmr.msra.gmra.mrb[8].mxu0 %vm1020_vm3, %v5194_v29  ;;  %v6142_v36 = vpack.c.bf16 %v5218_v34, %v1011_v35  ;;  %v4859_v35 = vld [vmem:[%s6035_s25 + $0x28] sm:$0xf]  ;;  %s4381_s25 = sadd.s32 2, %s4985_s28 }
 0x139   : > { %5253 = vmatprep.mubr.msk.f32.mxu0 %vm736_vm1, %v6077_v7  ;;  %5535 = vmatpush3.bf16.msra.mxu0 %v5532_v14 }
 0x13a   : > { %5529 = vmatprep.subr.bf16.mxu1 %v6142_v36  ;;  %5251 = vmatprep.subr.msk.mxu0 %vm749_vm2, %v4851_v17 }
 0x13d   : > { %5252 = vmatpush3.msk.msra.mxu0 %vm749_vm2, %v4851_v17 }
 0x13e   : > { %5254 = vmatmul.mubr.msk.f32.vlgmr.msra.gmra.mrb[10].mxu0 %vm736_vm1, %v6090_v15 }
 0x13f   : > { %5256 = vmatprep.mubr.msk.f32.mxu0 %vm736_vm1, %v6092_v16 }
 0x142   : > { %5257 = vmatmul.mubr.msk.f32.gmra.mrb[12].mxu0 %vm736_vm1, %v6100_v18 }
 0x143   : > { %5277 = vmatprep.mubr.msk.f32.mxu0 %vm736_vm1, %v6077_v7 }
 0x207   : > { %v5225_v39 = vpop.f32.mrb[4].mxu1 }
 0x208   : > { %v1099_v40 = vpop.f32.mrb[5].mxu1  ;;  %v1196_v41 = vmul.f32 0.35355338, %v5225_v39  ;;  %v4866_v39 = vld [vmem:[%s6040_s23 + $0x20] sm:$0xff] }
 0x209   : > { %v1195_v42 = vmul.f32 0.35355338, %v1099_v40 }
 0x20a   : > { %v1202_v49 = vsel %vm732_vm5, %v1196_v41, -1e+30  ;;  %v4867_v41 = vld [vmem:[%s6040_s23 + $0x28] sm:$0xf] }
 0x20b   : > { %v5232_v43 = vpop.f32.mrb[8].mxu0  ;;  %v1201_v44 = vsel %vm732_vm5, %v1195_v42, -1e+30  ;;  %v1209_v51 = vsel %vm1205_vm6, %v1202_v49, -inf }
 0x20c   : > { %v1186_v45 = vpop.f32.mrb[9].mxu0  ;;  %v1206_v46 = vsel %vm1205_vm6, %v1201_v44, -inf  ;;  %v1198_v47 = vmul.f32 0.35355338, %v5232_v43 }
 0x20d   : > { %v1197_v48 = vmul.f32 0.35355338, %v1186_v45  ;;  %1207 = vmax.xlane.f32.xlu0 %v1206_v46 }
 0x20e   : > { %v1204_v53 = vsel %vm732_vm5, %v1198_v47, -1e+30 }
 0x20f   : > { %v1203_v50 = vsel %vm732_vm5, %v1197_v48, -1e+30  ;;  %v1215_v54 = vsel %vm1205_vm6, %v1204_v53, -inf }
 0x210   : > { %v1212_v52 = vsel %vm1205_vm6, %v1203_v50, -inf }
 0x211   : > { %1210 = vmax.xlane.f32.xlu0 %v1209_v51  ;;  %1213 = vmax.xlane.f32.xlu1 %v1212_v52  ;;  %v5255_v42 = vpop.f32.mrb[10].mxu0 }
 0x212   : > { %v1486_v43 = vpop.f32.mrb[11].mxu0 }
 0x215   : > { %1216 = vmax.xlane.f32.xlu1 %v1215_v54 }
 0x29a   : > { %v1208_v55 = vpop.xlane.xlu0 %1207 }
 0x29b   : > { %v1218_v56 = vsub.f32 %v1201_v44, %v1208_v55  ;;  %v5258_v44 = vpop.f32.mrb[12].mxu0 }
 0x29c   : > { %v1496_v45 = vpop.f32.mrb[13].mxu0 }
 0x29d   : > { %v1222_v57 = vmul.f32 1.442695, %v1218_v56 }
 0x29e   : > { %v1211_v58 = vpop.xlane.xlu0 %1210  ;;  %v1214_v59 = vpop.xlane.xlu1 %1213 }
 0x29f   : > { %5718 = vpow2.f32 %v1222_v57  ;;  %v1219_v60 = vsub.f32 %v1202_v49, %v1211_v58  ;;  %v1220_v61 = vsub.f32 %v1203_v50, %v1214_v59 }
 0x2a1   : > { %v1224_v62 = vmul.f32 1.442695, %v1219_v60  ;;  %v1226_v63 = vmul.f32 1.442695, %v1220_v61 }
 0x2a2   : > { %v1217_v0 = vpop.xlane.xlu1 %1216 }
 0x2a3   : > { %5720 = vpow2.f32 %v1224_v62  ;;  %v1221_v1 = vsub.f32 %v1204_v53, %v1217_v0 }
 0x2a4   : > { %5722 = vpow2.f32 %v1226_v63 }
 0x2a5   : > { %v1228_v2 = vmul.f32 1.442695, %v1221_v1 }
 0x2a7   : > { %5724 = vpow2.f32 %v1228_v2 }
 0x2a9   : > { %v5719_v3 = vpop.eup %5718 }
 0x2aa   : > { %v1230_v4 = vsel %vm1205_vm6, %v5719_v3, 0.0 }
 0x2ab   : > { %1231 = vadd.xlane.f32.xlu0 %v1230_v4 }
 0x2ad   : > { %v5721_v5 = vpop.eup %5720 }
 0x2ae   : > { %v5723_v6 = vpop.eup %5722  ;;  %v1233_v8 = vsel %vm1205_vm6, %v5721_v5, 0.0 }
 0x2af   : > { %1234 = vadd.xlane.f32.xlu1 %v1233_v8  ;;  %v1236_v9 = vsel %vm1205_vm6, %v5723_v6, 0.0 }
 0x2b0   : > { %1237 = vadd.xlane.f32.xlu0 %v1236_v9 }
 0x2b1   : > { %v5725_v10 = vpop.eup %5724 }
 0x2b2   : > { %v1239_v11 = vsel %vm1205_vm6, %v5725_v10, 0.0 }
 0x2b3   : > { %1240 = vadd.xlane.f32.xlu1 %v1239_v11 }
 0x338   : > { %v1232_v19 = vpop.xlane.xlu0 %1231 }
 0x339   : > { %5726 = vrcp.f32 %v1232_v19 }
 0x33c   : > { %v1235_v20 = vpop.xlane.xlu1 %1234 }
 0x33d   : > { %v1238_v21 = vpop.xlane.xlu0 %1237  ;;  %5728 = vrcp.f32 %v1235_v20 }
 0x33e   : > { %5730 = vrcp.f32 %v1238_v21 }
 0x340   : > { %v1241_v23 = vpop.xlane.xlu1 %1240 }
 0x341   : > { %5732 = vrcp.f32 %v1241_v23 }
 0x343   : > { %v5727_v24 = vpop.eup %5726 }
 0x344   : > { %v1246_v25 = vmul.f32 %v5727_v24, %v5719_v3 }
 0x346   : > { %5237 = vmatprep.mubr.msk.f32.mxu1 %vm1205_vm6, %v1246_v25 }
 0x347   : > { %v5729_v28 = vpop.eup %5728 }
 0x348   : > { %v5731_v29 = vpop.eup %5730  ;;  %v1247_v30 = vmul.f32 %v5729_v28, %v5721_v5 }
 0x349   : > { %v1248_v32 = vmul.f32 %v5731_v29, %v5723_v6 }
 0x34a   : > { %5238 = vmatmul.mubr.msk.f32.vlgmr.msra.gmra.mrb[6].mxu1 %vm1205_vm6, %v1247_v30 }
 0x34b   : > { %v5733_v33 = vpop.eup %5732  ;;  %5531 = vmatpush3.bf16.msra.mxu1 %v6142_v36  ;;  %5244 = vmatprep.mubr.msk.f32.mxu1 %vm1205_vm6, %v1248_v32  ;;  %v4865_v36 = vld [vmem:[%s6040_s23 + $0x18] sm:$0xff]  ;;  %s4379_s23 = sadd.s32 1, %s4985_s28 }
 0x34c   : > { %v1249_v34 = vmul.f32 %v5733_v33, %v5725_v10  ;;  %5537 = vmatprep.subr.bf16.mxu1 %v5536_v31  ;;  %v5540_v40 = vpack.c.bf16 %v4866_v39, %v4865_v36  ;;  %v4885_v39 = vld [vmem:[%s6025_s19 + $0x8] sm:$0xff] }
 0x34e   : > { %5245 = vmatmul.mubr.msk.f32.vlgmr.msra.gmra.mrb[8].mxu1 %vm1205_vm6, %v1249_v34  ;;  %5541 = vmatprep.subr.bf16.mxu0 %v5540_v40 }
 0x34f   : > { %5539 = vmatpush3.bf16.msra.mxu1 %v5536_v31  ;;  %5265 = vmatprep.mubr.msk.f32.mxu1 %vm736_vm1, %v6077_v7 }
 0x350   : > { %5263 = vmatprep.subr.msk.mxu1 %vm749_vm2, %v4859_v35  ;;  %5543 = vmatpush3.bf16.msra.mxu0 %v5540_v40 }
 0x351   : > { %5275 = vmatprep.subr.msk.mxu0 %vm749_vm2, %v4867_v41 }
 0x353   : > { %5264 = vmatpush3.msk.msra.mxu1 %vm749_vm2, %v4859_v35 }
 0x354   : > { %5266 = vmatmul.mubr.msk.f32.vlgmr.msra.gmra.mrb[10].mxu1 %vm736_vm1, %v6090_v15  ;;  %5276 = vmatpush3.msk.msra.mxu0 %vm749_vm2, %v4867_v41 }
 0x355   : > { %5268 = vmatprep.mubr.msk.f32.mxu1 %vm736_vm1, %v6092_v16  ;;  %5278 = vmatmul.mubr.msk.f32.vlgmr.msra.gmra.mrb[14].mxu0 %vm736_vm1, %v6090_v15 }
 0x356   : > { %5280 = vmatprep.mubr.msk.f32.mxu0 %vm736_vm1, %v6092_v16 }
 0x358   : > { %5269 = vmatmul.mubr.msk.f32.gmra.mrb[12].mxu1 %vm736_vm1, %v6100_v18 }
 0x359   : > { %5281 = vmatmul.mubr.msk.f32.gmra.mrb[16].mxu0 %vm736_vm1, %v6100_v18  ;;  %5287 = vmatprep.mubr.msk.f32.mxu1 %vm1020_vm3, %v1486_v43 }
 0x35a   : > { %5294 = vmatprep.mubr.msk.f32.mxu0 %vm1020_vm3, %v1496_v45 }
 0x41d   : > { %v6209_v46 = vpop.f32.mrb[6].mxu1 }
 0x41e   : > { %v6211_v47 = vpop.f32.mrb[7].mxu1 }
 0x421   : > { %v6213_v48 = vpop.f32.mrb[8].mxu1 }
 0x422   : > { %v6215_v49 = vpop.f32.mrb[9].mxu1 }
 0x427   : > { %v5267_v50 = vpop.f32.mrb[10].mxu1 }
 0x428   : > { %v1578_v51 = vpop.f32.mrb[11].mxu1  ;;  %v5279_v56 = vpop.f32.mrb[14].mxu0 }
 0x429   : > { %v5544_v52 = vpack.c.bf16 %v5267_v50, %v1578_v51  ;;  %v1670_v57 = vpop.f32.mrb[15].mxu0 }
 0x42a   : > { %v5556_v58 = vpack.c.bf16 %v5279_v56, %v1670_v57  ;;  %v1412_v56 = vld [vmem:[%s6025_s19] sm:$0xff]  ;;  %s6686_s19 = sld [smem:[#allocation3 + %s4379_s23]] }
 0x42b   : > { %v5270_v53 = vpop.f32.mrb[12].mxu1  ;;  %5546 = vmatprep.subr.msk.bf16.mxu1 %vm6124_vm4, %v5544_v52 }
 0x42c   : > { %v1588_v54 = vpop.f32.mrb[13].mxu1  ;;  %5549 = vmatpush3.bf16.xpose.msk.msra.mxu1 %vm6124_vm4, %v5544_v52  ;;  %v5282_v59 = vpop.f32.mrb[16].mxu0 }
 0x42d   : > { %v5550_v55 = vpack.c.bf16 %v5270_v53, %v1588_v54  ;;  %v1680_v60 = vpop.f32.mrb[17].mxu0  ;;  %5557 = vmatprep.subr.bf16.mxu1 %v5556_v58 }
 0x42e   : > { %v6227_v61 = vpack.c.bf16 %v5282_v59, %v1680_v60 }
 0x42f   : > { %5552 = vmatprep.subr.msk.bf16.mxu0 %vm6124_vm4, %v5550_v55 }
 0x430   : > { %5555 = vmatpush3.bf16.xpose.msk.msra.mxu0 %vm6124_vm4, %v5550_v55 }
 0x431   : > { %5311 = vmatprep.subr.mxu0 %v4885_v39 }
 0x433   : > { %5288 = vmatmul.mubr.msk.f32.vlgmr.msra.gmra.mrb[14].mxu1 %vm1020_vm3, %v5255_v42 }
 0x434   : > { %5559 = vmatpush3.bf16.msra.mxu1 %v5556_v58 }
 0x435   : > { %5561 = vmatprep.subr.bf16.mxu1 %v6227_v61 }
 0x437   : > { %5295 = vmatmul.mubr.msk.f32.vlgmr.msra.gmra.mrb[18].mxu0 %vm1020_vm3, %v5258_v44 }
 0x438   : > { %5312 = vmatpush3.msra.mxu0 %v4885_v39 }
 0x439   : > { %5319 = vmatprep.subr.mxu0 %v1412_v56 }
 0x506   : > { %v5289_v62 = vpop.f32.mrb[14].mxu1 }
 0x507   : > { %v1864_v63 = vmul.f32 0.35355338, %v5289_v62  ;;  %v1767_v0 = vpop.f32.mrb[15].mxu1 }
 0x508   : > { %v1863_v22 = vmul.f32 0.35355338, %v1767_v0  ;;  %v6272_v0 = vld [vmem:[%s6045_s18] sm:$0x1f]  ;;  %s6692_s18 = sld [smem:[#allocation3 + %s4381_s25]] }
 0x509   : > { %v1868_v1 = vsel %vm732_vm5, %v1864_v63, -1e+30 }
 0x50a   : > { %v5296_v2 = vpop.f32.mrb[18].mxu0  ;;  %v1874_v3 = vsel %vm1205_vm6, %v1868_v1, -inf  ;;  %v1867_v4 = vsel %vm732_vm5, %v1863_v22, -1e+30 }
 0x50b   : > { %v1866_v5 = vmul.f32 0.35355338, %v5296_v2  ;;  %v1854_v6 = vpop.f32.mrb[19].mxu0  ;;  %1875 = vmax.xlane.f32.xlu1 %v1874_v3  ;;  %v1871_v8 = vsel %vm1205_vm6, %v1867_v4, -inf }
 0x50c   : > { %v1865_v9 = vmul.f32 0.35355338, %v1854_v6  ;;  %1872 = vmax.xlane.f32.xlu0 %v1871_v8 }
 0x50d   : > { %v1870_v10 = vsel %vm732_vm5, %v1866_v5, -1e+30 }
 0x50e   : > { %v1880_v11 = vsel %vm1205_vm6, %v1870_v10, -inf  ;;  %v1869_v12 = vsel %vm732_vm5, %v1865_v9, -1e+30 }
 0x50f   : > { %1881 = vmax.xlane.f32.xlu1 %v1880_v11  ;;  %v1877_v13 = vsel %vm1205_vm6, %v1869_v12, -inf }
 0x510   : > { %1878 = vmax.xlane.f32.xlu0 %v1877_v13 }
 0x598   : > { %v1876_v14 = vpop.xlane.xlu1 %1875 }
 0x599   : > { %v1884_v17 = vsub.f32 %v1868_v1, %v1876_v14  ;;  %v1873_v19 = vpop.xlane.xlu0 %1872 }
 0x59a   : > { %v1883_v20 = vsub.f32 %v1867_v4, %v1873_v19 }
 0x59b   : > { %v1889_v21 = vmul.f32 1.442695, %v1884_v17 }
 0x59c   : > { %v1887_v23 = vmul.f32 1.442695, %v1883_v20  ;;  %v1882_v24 = vpop.xlane.xlu1 %1881 }
 0x59d   : > { %5734 = vpow2.f32 %v1889_v21  ;;  %v1886_v25 = vsub.f32 %v1870_v10, %v1882_v24  ;;  %v1879_v26 = vpop.xlane.xlu0 %1878 }
 0x59e   : > { %5736 = vpow2.f32 %v1887_v23  ;;  %v1885_v27 = vsub.f32 %v1869_v12, %v1879_v26 }
 0x59f   : > { %v1893_v28 = vmul.f32 1.442695, %v1886_v25 }
 0x5a0   : > { %v1891_v38 = vmul.f32 1.442695, %v1885_v27 }
 0x5a1   : > { %5738 = vpow2.f32 %v1893_v28 }
 0x5a2   : > { %5740 = vpow2.f32 %v1891_v38 }
 0x5a7   : > { %v5735_v29 = vpop.eup %5734 }
 0x5a8   : > { %v5737_v30 = vpop.eup %5736  ;;  %v1898_v31 = vsel %vm1205_vm6, %v5735_v29, 0.0 }
 0x5a9   : > { %1899 = vadd.xlane.f32.xlu1 %v1898_v31  ;;  %v1895_v32 = vsel %vm1205_vm6, %v5737_v30, 0.0 }
 0x5aa   : > { %1896 = vadd.xlane.f32.xlu0 %v1895_v32 }
 0x5ab   : > { %v5739_v33 = vpop.eup %5738 }
 0x5ac   : > { %v5741_v34 = vpop.eup %5740  ;;  %v1904_v35 = vsel %vm1205_vm6, %v5739_v33, 0.0 }
 0x5ad   : > { %1905 = vadd.xlane.f32.xlu1 %v1904_v35  ;;  %v1901_v36 = vsel %vm1205_vm6, %v5741_v34, 0.0 }
 0x5ae   : > { %1902 = vadd.xlane.f32.xlu0 %v1901_v36 }
 0x636   : > { %v1900_v40 = vpop.xlane.xlu1 %1899 }
 0x637   : > { %5742 = vrcp.f32 %v1900_v40  ;;  %v1897_v41 = vpop.xlane.xlu0 %1896 }
 0x638   : > { %5744 = vrcp.f32 %v1897_v41 }
 0x63a   : > { %v1906_v42 = vpop.xlane.xlu1 %1905 }
 0x63b   : > { %5746 = vrcp.f32 %v1906_v42  ;;  %v1903_v43 = vpop.xlane.xlu0 %1902 }
 0x63c   : > { %5748 = vrcp.f32 %v1903_v43  ;;  %v2366_v43 = vld [vmem:[%s6060_s0] sm:$0xff] }
 0x641   : > { %v5743_v44 = vpop.eup %5742 }
 0x642   : > { %v5745_v45 = vpop.eup %5744  ;;  %v1912_v51 = vmul.f32 %v5743_v44, %v5735_v29  ;;  %v2367_v44 = vld [vmem:[%s6060_s0 + $0x8] sm:$0xff] }
 0x643   : > { %v1911_v50 = vmul.f32 %v5745_v45, %v5737_v30  ;;  %v5564_v45 = vpack.c.bf16 %v2367_v44, %v2366_v43 }
 0x645   : > { %v5747_v52 = vpop.eup %5746  ;;  %5301 = vmatprep.mubr.msk.f32.mxu1 %vm1205_vm6, %v1911_v50  ;;  %v2368_v50 = vld [vmem:[%s6060_s0 + $0x10] sm:$0xf]  ;;  %s5866_s0 = smov 112  }
 0x646   : > { %v5749_v53 = vpop.eup %5748  ;;  %5302 = vmatmul.mubr.msk.f32.vlgmr.msra.gmra.mrb[16].mxu1 %vm1205_vm6, %v1912_v51  ;;  %v1914_v55 = vmul.f32 %v5747_v52, %v5739_v33  ;;  %v2679_v51 = vld [vmem:[%s6813_s11] sm:$0xff]  ;;  %v2680_v52 = vld [vmem:[%s6813_s11 + $0x8] sm:$0xff] }
 0x647   : > { %5563 = vmatpush3.bf16.msra.mxu1 %v6227_v61  ;;  %v1913_v54 = vmul.f32 %v5749_v53, %v5741_v34  ;;  %v6266_v61 = vshrl.u32 %v730_v37, 7  ;;  %v5568_v53 = vpack.c.bf16 %v2680_v52, %v2679_v51 }
 0x648   : > { %5615 = vmatprep.subr.mxu1 %v4885_v39 }
 0x649   : > { %5308 = vmatprep.mubr.msk.f32.mxu1 %vm1205_vm6, %v1913_v54  ;;  %v2344_v62 = vsub.s32 2, %v6266_v61  ;;  %v4504_v63 = vsub.s32 4, %v6266_v61  ;;  %v2275_v37 = vsub.s32 0, %v6266_v61 }
 0x64a   : > { %5309 = vmatmul.mubr.msk.f32.vlgmr.msra.gmra.mrb[18].mxu1 %vm1205_vm6, %v1914_v55 }
 0x64b   : > { %5616 = vmatpush3.msra.mxu1 %v4885_v39  ;;  %v6275_v22 = vrot.slane %v6272_v0, %v2344_v62  ;;  %v2276_v2 = vrot.slane %v6272_v0, %v2275_v37 }
 0x64c   : > { %5565 = vmatprep.subr.bf16.mxu1 %v5564_v45 }
 0x719   : > { %v5303_v57 = vpop.f32.mrb[16].mxu1 }
 0x71a   : > { %v1987_v58 = vpop.f32.mrb[17].mxu1 }
 0x71b   : > { %5313 = vmatprep.mubr.msk.f32.mxu0 %vm1020_vm3, %v1987_v58 }
 0x71c   : > { %5314 = vmatmul.mubr.msk.f32.vlgmr.msra.gmra.mrb[20].mxu0 %vm1020_vm3, %v5303_v57 }
 0x71d   : > { %v5310_v59 = vpop.f32.mrb[18].mxu1  ;;  %5320 = vmatpush3.msra.mxu0 %v1412_v56  ;;  %5321 = vmatprep.mubr.msk.f32.mxu0 %vm1020_vm3, %v6211_v47  ;;  %v4496_v47 = vsub.s32 3, %v6266_v61 }
 0x71e   : > { %v2068_v60 = vpop.f32.mrb[19].mxu1 }
 0x71f   : > { %5316 = vmatprep.mubr.msk.f32.mxu1 %vm1020_vm3, %v2068_v60 }
 0x720   : > { %5317 = vmatmul.mubr.msk.f32.vlgmr.msra.gmra.mrb[20].mxu1 %vm1020_vm3, %v5310_v59 }
 0x721   : > { %5567 = vmatpush3.bf16.msra.mxu1 %v5564_v45 }
 0x722   : > { %5331 = vmatprep.subr.msk.mxu1 %vm749_vm2, %v2368_v50 }
 0x724   : > { %5322 = vmatmul.mubr.msk.f32.vlgmr.msra.gmra.mrb[20].mxu0 %vm1020_vm3, %v6209_v46  ;;  %v6278_v46 = vrot.slane %v6272_v0, %v4496_v47 }
 0x725   : > { %5324 = vmatprep.mubr.msk.f32.mxu0 %vm1020_vm3, %v6215_v49  ;;  %v6281_v49 = vrot.slane %v6272_v0, %v4504_v63  ;;  %5332 = vmatpush3.msk.msra.mxu1 %vm749_vm2, %v2368_v50 }
 0x726   : > { %5569 = vmatprep.subr.bf16.mxu1 %v5568_v53 }
 0x728   : > { %5325 = vmatmul.mubr.msk.f32.gmra.mrb[22].mxu0 %vm1020_vm3, %v6213_v48 }
 0x7f3   : > { %v5318_v48 = vpop.f32.mrb[20].mxu1 }
 0x7f4   : > { %v2167_v1 = vpop.f32.mrb[21].mxu1 }
 0x7f7   : > { %v5323_v3 = vpop.f32.mrb[20].mxu0 }
 0x7f8   : > { %v2278_v4 = vadd.f32 %v5323_v3, %v2276_v2  ;;  %v2254_v5 = vpop.f32.mrb[21].mxu0 }
 0x7f9   : > { %v2277_v6 = vadd.f32 %v2276_v2, %v2254_v5 }
 0x7fa   : > { %v2284_v8 = vsel %vm736_vm1, %v2278_v4, 0.0 }
 0x7fb   : > { %2285 = vadd.xlane.f32.xlu1 %v2284_v8  ;;  %v5326_v9 = vpop.f32.mrb[22].mxu0  ;;  %v2281_v10 = vsel %vm736_vm1, %v2277_v6, 0.0 }
 0x7fc   : > { %v2270_v11 = vadd.f32 %v5326_v9, %v5318_v48  ;;  %2282 = vadd.xlane.f32.xlu0 %v2281_v10  ;;  %v2264_v12 = vpop.f32.mrb[23].mxu0 }
 0x7fd   : > { %v2265_v13 = vadd.f32 %v2264_v12, %v2167_v1  ;;  %v2336_v1 = vsub.s32 1, %v6266_v61 }
 0x7fe   : > { %v2280_v14 = vadd.f32 %v2276_v2, %v2270_v11 }
 0x7ff   : > { %v2279_v17 = vadd.f32 %v2276_v2, %v2265_v13  ;;  %v2337_v3 = vrot.slane %v6272_v0, %v2336_v1 }
 0x800   : > { %v2290_v19 = vsel %vm736_vm1, %v2280_v14, 0.0 }
 0x801   : > { %2291 = vadd.xlane.f32.xlu1 %v2290_v19  ;;  %v2287_v20 = vsel %vm736_vm1, %v2279_v17, 0.0 }
 0x802   : > { %2288 = vadd.xlane.f32.xlu0 %v2287_v20 }
 0x888   : > { %v2286_v21 = vpop.xlane.xlu1 %2285 }
 0x889   : > { %v2295_v23 = vmul.f32 0.05, %v2286_v21  ;;  %v2283_v24 = vpop.xlane.xlu0 %2282 }
 0x88a   : > { %v2294_v25 = vmul.f32 0.05, %v2283_v24 }
 0x88b   : > { %v2299_v26 = vsub.f32 %v2278_v4, %v2295_v23 }
 0x88c   : > { %v2298_v27 = vsub.f32 %v2277_v6, %v2294_v25 }
 0x88d   : > { %v2303_v28 = vmul.f32 %v2299_v26, %v2299_v26 }
 0x88e   : > { %v2292_v38 = vpop.xlane.xlu1 %2291  ;;  %v2302_v29 = vmul.f32 %v2298_v27, %v2298_v27 }
 0x88f   : > { %v2297_v30 = vmul.f32 0.05, %v2292_v38  ;;  %v2289_v31 = vpop.xlane.xlu0 %2288  ;;  %v2309_v32 = vsel %vm736_vm1, %v2303_v28, 0.0 }
 0x890   : > { %v2296_v33 = vmul.f32 0.05, %v2289_v31  ;;  %2310 = vadd.xlane.f32.xlu1 %v2309_v32  ;;  %v2306_v34 = vsel %vm736_vm1, %v2302_v29, 0.0 }
 0x891   : > { %v2301_v35 = vsub.f32 %v2280_v14, %v2297_v30  ;;  %2307 = vadd.xlane.f32.xlu0 %v2306_v34  ;;  %v2681_v30 = vld [vmem:[%s6813_s11 + $0x10] sm:$0xf] }
 0x892   : > { %v2300_v36 = vsub.f32 %v2279_v17, %v2296_v33 }
 0x893   : > { %v2305_v39 = vmul.f32 %v2301_v35, %v2301_v35 }
 0x894   : > { %v2304_v40 = vmul.f32 %v2300_v36, %v2300_v36 }
 0x895   : > { %v2315_v41 = vsel %vm736_vm1, %v2305_v39, 0.0 }
 0x896   : > { %2316 = vadd.xlane.f32.xlu1 %v2315_v41  ;;  %v2312_v42 = vsel %vm736_vm1, %v2304_v40, 0.0 }
 0x897   : > { %2313 = vadd.xlane.f32.xlu0 %v2312_v42 }
 0x91d   : > { %v2311_v54 = vpop.xlane.xlu1 %2310 }
 0x91e   : > { %v2319_v55 = vmul.f32 0.05, %v2311_v54  ;;  %v2308_v56 = vpop.xlane.xlu0 %2307 }
 0x91f   : > { %v2318_v57 = vmul.f32 0.05, %v2308_v56 }
 0x920   : > { %v2323_v58 = vadd.f32 1e-05, %v2319_v55  ;;  %v5861_v55 = vmov 0  }
 0x921   : > { %v2322_v59 = vadd.f32 1e-05, %v2318_v57 }
 0x922   : > { %5750 = vrsqrt.f32 %v2323_v58 }
 0x923   : > { %5752 = vrsqrt.f32 %v2322_v59  ;;  %v2317_v60 = vpop.xlane.xlu1 %2316 }
 0x924   : > { %v2321_v62 = vmul.f32 0.05, %v2317_v60  ;;  %v2314_v47 = vpop.xlane.xlu0 %2313 }
 0x925   : > { %v2320_v63 = vmul.f32 0.05, %v2314_v47 }
 0x926   : > { %v2325_v48 = vadd.f32 1e-05, %v2321_v62 }
 0x927   : > { %v2324_v2 = vadd.f32 1e-05, %v2320_v63 }
 0x928   : > { %5754 = vrsqrt.f32 %v2325_v48 }
 0x929   : > { %5756 = vrsqrt.f32 %v2324_v2 }
 0x92c   : > { %v5751_v4 = vpop.eup %5750 }
 0x92d   : > { %v5753_v5 = vpop.eup %5752  ;;  %v2331_v6 = vmul.f32 %v5751_v4, %v2299_v26 }
 0x92e   : > { %v2330_v8 = vmul.f32 %v5753_v5, %v2298_v27 }
 0x92f   : > { %v2339_v9 = vmul.f32 %v2337_v3, %v2331_v6 }
 0x930   : > { %v2338_v10 = vmul.f32 %v2337_v3, %v2330_v8 }
 0x931   : > { %v2347_v11 = vadd.f32 %v6275_v22, %v2339_v9 }
 0x932   : > { %v5755_v12 = vpop.eup %5754  ;;  %v2346_v13 = vadd.f32 %v6275_v22, %v2338_v10 }
 0x933   : > { %v5757_v14 = vpop.eup %5756  ;;  %v2333_v17 = vmul.f32 %v5755_v12, %v2301_v35  ;;  %vm2351_vm7 = vcmp.gt.f32.partialorder %v2347_v11, 0.0  ;;  %v2355_v19 = vmul.f32 0.01, %v2347_v11 }
 0x934   : > { %v2332_v20 = vmul.f32 %v5757_v14, %v2300_v36  ;;  %vm2350_vm8 = vcmp.gt.f32.partialorder %v2346_v13, 0.0  ;;  %v2354_v21 = vmul.f32 0.01, %v2346_v13 }
 0x935   : > { %v2341_v23 = vmul.f32 %v2337_v3, %v2333_v17  ;;  %v2359_v0 = vsel %vm2351_vm7, %v2347_v11, %v2355_v19 }
 0x936   : > { %v2340_v24 = vmul.f32 %v2337_v3, %v2332_v20  ;;  %v2358_v25 = vsel %vm2350_vm8, %v2346_v13, %v2354_v21  ;;  %v6317_v28 = vadd.f32 %v2359_v0, %v6090_v15 }
 0x937   : > { %v6313_v26 = vadd.f32 %v2358_v25, %v6077_v7  ;;  %v2349_v27 = vadd.f32 %v6275_v22, %v2341_v23 }
 0x938   : > { %v2348_v38 = vadd.f32 %v6275_v22, %v2340_v24 }
 0x939   : > { %5333 = vmatprep.mubr.msk.f32.mxu1 %vm736_vm1, %v6313_v26  ;;  %vm2353_vm9 = vcmp.gt.f32.partialorder %v2349_v27, 0.0  ;;  %v2357_v29 = vmul.f32 0.01, %v2349_v27 }
 0x93a   : > { %5334 = vmatmul.mubr.msk.f32.vlgmr.msra.gmra.mrb[22].mxu1 %vm736_vm1, %v6317_v28  ;;  %vm2352_vm10 = vcmp.gt.f32.partialorder %v2348_v38, 0.0  ;;  %v2356_v7 = vmul.f32 0.01, %v2348_v38 }
 0x93b   : > { %5571 = vmatpush3.bf16.msra.mxu1 %v5568_v53  ;;  %v2361_v15 = vsel %vm2353_vm9, %v2349_v27, %v2357_v29 }
 0x93c   : > { %v2360_v31 = vsel %vm2352_vm10, %v2348_v38, %v2356_v7  ;;  %5343 = vmatprep.subr.msk.mxu1 %vm749_vm2, %v2681_v30  ;;  %v6332_v32 = vadd.f32 %v2361_v15, %v6100_v18  ;;  %v6357_v18 = vld [vmem:[%s6050_s3] sm:$0x3]  ;;  %v5862_v7 = vmov 0.0   ;;  %s5863_s3 = smov 120  }
 0x93d   : > { %v6329_v22 = vadd.f32 %v2360_v31, %v6092_v16  ;;  %v6350_v16 = vld [vmem:[%s6814_s12] sm:$0xf]  ;;  %v2372_v33 = vrot.slane %v6357_v18, %v2275_v37 }
 0x93e   : > { %5351 = vmatprep.subr.msk.mxu0 %vm749_vm2, %v6350_v16 }
 0x93f   : > { %5336 = vmatprep.mubr.msk.f32.mxu1 %vm736_vm1, %v6329_v22  ;;  %5344 = vmatpush3.msk.msra.mxu1 %vm749_vm2, %v2681_v30 }
 0x940   : > { %5337 = vmatmul.mubr.msk.f32.gmra.mrb[24].mxu1 %vm736_vm1, %v6332_v32  ;;  %5352 = vmatpush3.msk.msra.mxu0 %vm749_vm2, %v6350_v16 }
 0x941   : > { %5345 = vmatprep.mubr.msk.f32.mxu1 %vm736_vm1, %v6313_v26 }
 0x944   : > { %5346 = vmatmul.mubr.msk.f32.vlgmr.msra.gmra.mrb[26].mxu1 %vm736_vm1, %v6317_v28 }
 0x945   : > { %5348 = vmatprep.mubr.msk.f32.mxu1 %vm736_vm1, %v6329_v22 }
 0x948   : > { %5349 = vmatmul.mubr.msk.f32.gmra.mrb[28].mxu1 %vm736_vm1, %v6332_v32 }
 0xa0d   : > { %v5335_v34 = vpop.f32.mrb[22].mxu1 }
 0xa0e   : > { %v6362_v35 = vadd.f32 %v5335_v34, %v2372_v33  ;;  %v2454_v36 = vpop.f32.mrb[23].mxu1 }
 0xa0f   : > { %v6364_v39 = vadd.f32 %v2454_v36, %v2372_v33  ;;  %v2771_v36 = vld [vmem:[%s6055_s4 + $0x8] sm:$0xff] }
 0xa10   : > { %2479 = vrot.lane.b32.xlu1 %v6362_v35, %s5860_s16 }
 0xa11   : > { %2477 = vrot.lane.b32.xlu0 %v6364_v39, %s5860_s16 }
 0xa13   : > { %v5338_v40 = vpop.f32.mrb[24].mxu1 }
 0xa14   : > { %v2464_v41 = vpop.f32.mrb[25].mxu1  ;;  %v6378_v44 = vadd.f32 %v5338_v40, %v2372_v33 }
 0xa15   : > { %v6370_v42 = vadd.f32 %v2464_v41, %v2372_v33 }
 0xa17   : > { %v6372_v43 = vpop.f32.mrb[26].mxu1  ;;  %2481 = vrot.lane.b32.xlu1 %v6370_v42, %s5860_s16 }
 0xa18   : > { %v6376_v37 = vpop.f32.mrb[27].mxu1 }
 0xa19   : > { %5353 = vmatprep.mubr.msk.f32.mxu0 %vm2665_vm11, %v6376_v37 }
 0xa1a   : > { %5354 = vmatmul.mubr.msk.f32.vlgmr.msra.gmra.mrb[24].mxu0 %vm2665_vm11, %v6372_v43 }
 0xa1b   : > { %v6384_v45 = vpop.f32.mrb[28].mxu1  ;;  %2483 = vrot.lane.b32.xlu1 %v6378_v44, %s5860_s16 }
 0xa1c   : > { %v6388_v50 = vpop.f32.mrb[29].mxu1 }
 0xa1d   : > { %5356 = vmatprep.mubr.msk.f32.mxu0 %vm2665_vm11, %v6388_v50 }
 0xa1e   : > { %5357 = vmatmul.mubr.msk.f32.gmra.mrb[26].mxu0 %vm2665_vm11, %v6384_v45 }
 0xa82   : > { %v2480_v51 = vpop.permute.xlu1 %2479 }
 0xa83   : > { %vm2490_vm12 = vcmp.gt.f32.partialorder %v6362_v35, %v2480_v51  ;;  %v2478_v52 = vpop.permute.xlu0 %2477 }
 0xa84   : > { %vm2489_vm13 = vcmp.gt.f32.partialorder %v6364_v39, %v2478_v52  ;;  %v2498_v53 = vsel %vm2490_vm12, %v6362_v35, %v2480_v51  ;;  %v2494_v56 = vsel %vm2490_vm12, 1, %v5861_v55 }
 0xa85   : > { %2507 = vrot.lane.b32.xlu1 %v2498_v53, %s5860_s16  ;;  %v2497_v54 = vsel %vm2489_vm13, %v6364_v39, %v2478_v52  ;;  %v2493_v58 = vsel %vm2489_vm13, 1, %v5861_v55 }
 0xa86   : > { %2505 = vrot.lane.b32.xlu0 %v2497_v54, %s5860_s16 }
 0xa89   : > { %2523 = vrot.lane.b32.xlu1 %v2494_v56, %s5860_s16  ;;  %v2482_v57 = vpop.permute.xlu1 %2481 }
 0xa8a   : > { %vm2491_vm14 = vcmp.gt.f32.partialorder %v6370_v42, %v2482_v57  ;;  %2521 = vrot.lane.b32.xlu0 %v2493_v58, %s5860_s16 }
 0xa8b   : > { %v2499_v60 = vsel %vm2491_vm14, %v6370_v42, %v2482_v57  ;;  %v2495_v47 = vsel %vm2491_vm14, 1, %v5861_v55 }
 0xa8d   : > { %v2484_v59 = vpop.permute.xlu1 %2483 }
 0xa8e   : > { %vm2492_vm15 = vcmp.gt.f32.partialorder %v6378_v44, %v2484_v59  ;;  %2509 = vrot.lane.b32.xlu0 %v2499_v60, %s5860_s16 }
 0xa8f   : > { %v2500_v62 = vsel %vm2492_vm15, %v6378_v44, %v2484_v59  ;;  %v2496_v63 = vsel %vm2492_vm15, 1, %v5861_v55 }
 0xa90   : > { %2511 = vrot.lane.b32.xlu1 %v2500_v62, %s5860_s16 }
 0xa92   : > { %2525 = vrot.lane.b32.xlu0 %v2495_v47, %s5860_s16 }
 0xa94   : > { %2527 = vrot.lane.b32.xlu1 %v2496_v63, %s5860_s16 }
 0xaed   : > { %v6410_v48 = vpop.f32.mrb[24].mxu0 }
 0xaee   : > { %v6412_v2 = vpop.f32.mrb[25].mxu0 }
 0xaf1   : > { %v6414_v3 = vpop.f32.mrb[26].mxu0 }
 0xaf2   : > { %v6416_v4 = vpop.f32.mrb[27].mxu0 }
 0xaf7   : > { %v2508_v5 = vpop.permute.xlu1 %2507 }
 0xaf8   : > { %vm2518_vm0 = vcmp.gt.f32.partialorder %v6362_v35, %v2508_v5  ;;  %v2506_v6 = vpop.permute.xlu0 %2505 }
 0xaf9   : > { %vm2517_vm4 = vcmp.gt.f32.partialorder %v6364_v39, %v2506_v6  ;;  %v2534_v8 = vsel %vm2518_vm0, %v6362_v35, %v2508_v5 }
 0xafa   : > { %2543 = vrot.lane.b32.xlu1 %v2534_v8, %s5860_s16  ;;  %v2533_v9 = vsel %vm2517_vm4, %v6364_v39, %v2506_v6 }
 0xafb   : > { %v2524_v10 = vpop.permute.xlu1 %2523  ;;  %2541 = vrot.lane.b32.xlu0 %v2533_v9, %s5860_s16 }
 0xafc   : > { %v2530_v11 = vsel %vm2518_vm0, 2, %v2524_v10  ;;  %v2522_v12 = vpop.permute.xlu0 %2521 }
 0xafd   : > { %v2529_v13 = vsel %vm2517_vm4, 2, %v2522_v12 }
 0xafe   : > { %2559 = vrot.lane.b32.xlu1 %v2530_v11, %s5860_s16 }
 0xaff   : > { %2557 = vrot.lane.b32.xlu0 %v2529_v13, %s5860_s16 }
 0xb00   : > { %v2510_v14 = vpop.permute.xlu0 %2509 }
 0xb01   : > { %vm2519_vm5 = vcmp.gt.f32.partialorder %v6370_v42, %v2510_v14 }
 0xb02   : > { %v2512_v17 = vpop.permute.xlu1 %2511  ;;  %v2535_v19 = vsel %vm2519_vm5, %v6370_v42, %v2510_v14 }
 0xb03   : > { %vm2520_vm7 = vcmp.gt.f32.partialorder %v6378_v44, %v2512_v17  ;;  %2545 = vrot.lane.b32.xlu0 %v2535_v19, %s5860_s16 }
 0xb04   : > { %v2526_v20 = vpop.permute.xlu0 %2525  ;;  %v2536_v21 = vsel %vm2520_vm7, %v6378_v44, %v2512_v17 }
 0xb05   : > { %v2531_v23 = vsel %vm2519_vm5, 2, %v2526_v20  ;;  %2547 = vrot.lane.b32.xlu1 %v2536_v21, %s5860_s16 }
 0xb06   : > { %v2528_v0 = vpop.permute.xlu1 %2527 }
 0xb07   : > { %v2532_v24 = vsel %vm2520_vm7, 2, %v2528_v0  ;;  %2561 = vrot.lane.b32.xlu0 %v2531_v23, %s5860_s16 }
 0xb09   : > { %2563 = vrot.lane.b32.xlu1 %v2532_v24, %s5860_s16 }
 0xb6c   : > { %v2544_v25 = vpop.permute.xlu1 %2543 }
 0xb6d   : > { %v2542_v27 = vpop.permute.xlu0 %2541  ;;  %vm2554_vm8 = vcmp.gt.f32.partialorder %v6362_v35, %v2544_v25  ;;  %v2770_v35 = vld [vmem:[%s6055_s4] sm:$0xff]  ;;  %s5865_s4 = smov 124  }
 0xb6e   : > { %vm2553_vm9 = vcmp.gt.f32.partialorder %v6364_v39, %v2542_v27  ;;  %v6443_v57 = vpack.c.bf16 %v2771_v36, %v2770_v35 }
 0xb70   : > { %v2560_v38 = vpop.permute.xlu1 %2559  ;;  %5573 = vmatprep.subr.bf16.mxu1 %v6443_v57 }
 0xb71   : > { %v2566_v29 = vsel %vm2554_vm8, 3, %v2560_v38  ;;  %v2558_v30 = vpop.permute.xlu0 %2557  ;;  %5575 = vmatpush3.bf16.msra.mxu1 %v6443_v57 }
 0xb72   : > { %vm2570_vm10 = vcmp.eq.s32.totalorder %v2566_v29, 0  ;;  %vm2582_vm12 = vcmp.eq.s32.totalorder %v2566_v29, 1  ;;  %vm2594_vm13 = vcmp.eq.s32.totalorder %v2566_v29, 2  ;;  %vm2606_vm14 = vcmp.eq.s32.totalorder %v2566_v29, 3  ;;  %5379 = vmatprep.subr.msk.mxu1 %vm749_vm2, %v6350_v16 }
 0xb73   : > { %v6436_v15 = vsel %vm2606_vm14, 1.0, %v5862_v7  ;;  %v2565_v31 = vsel %vm2553_vm9, 3, %v2558_v30  ;;  %v4904_v33 = vsel %vm2582_vm12, 1.0, %v5862_v7  ;;  %v4900_v34 = vsel %vm2570_vm10, 1.0, %v5862_v7 }
 0xb74   : > { %vm2569_vm15 = vcmp.eq.s32.totalorder %v2565_v31, 0  ;;  %vm2581_vm0 = vcmp.eq.s32.totalorder %v2565_v31, 1  ;;  %vm2593_vm4 = vcmp.eq.s32.totalorder %v2565_v31, 2  ;;  %vm2605_vm5 = vcmp.eq.s32.totalorder %v2565_v31, 3 }
 0xb75   : > { %v6440_v39 = vsel %vm2605_vm5, 1.0, %v5862_v7  ;;  %v2546_v40 = vpop.permute.xlu0 %2545  ;;  %v4903_v41 = vsel %vm2581_vm0, 1.0, %v5862_v7  ;;  %v4899_v51 = vsel %vm2569_vm15, 1.0, %v5862_v7  ;;  %v4907_v55 = vsel %vm2593_vm4, 1.0, %v5862_v7 }
 0xb76   : > { %v5693_v52 = vpack.i.bf16 %v4904_v33, %v4903_v41  ;;  %v5688_v53 = vpack.i.bf16 %v4900_v34, %v4899_v51  ;;  %v4908_v56 = vsel %vm2594_vm13, 1.0, %v5862_v7  ;;  %vm2555_vm7 = vcmp.gt.f32.partialorder %v6370_v42, %v2546_v40 }
 0xb77   : > { %v2548_v54 = vpop.permute.xlu1 %2547  ;;  %v5698_v60 = vpack.i.bf16 %v4908_v56, %v4907_v55  ;;  %vm2674_vm5 = vcmask 97280  }
 0xb78   : > { %5694 = vrot.lane.b32.xlu1 %v5693_v52, %s5863_s3  ;;  %5689 = vrot.lane.b32.xlu0 %v5688_v53, %s5864_s22  ;;  %vm2556_vm8 = vcmp.gt.f32.partialorder %v6378_v44, %v2548_v54 }
 0xb79   : > { %v2562_v58 = vpop.permute.xlu0 %2561 }
 0xb7a   : > { %v2567_v59 = vsel %vm2555_vm7, 3, %v2562_v58  ;;  %vm4401_vm7 = vcmask 1041408  }
 0xb7b   : > { %vm2571_vm9 = vcmp.eq.s32.totalorder %v2567_v59, 0  ;;  %vm2583_vm10 = vcmp.eq.s32.totalorder %v2567_v59, 1  ;;  %vm2607_vm12 = vcmp.eq.s32.totalorder %v2567_v59, 3  ;;  %v2564_v62 = vpop.permute.xlu1 %2563  ;;  %vm2595_vm4 = vcmp.eq.s32.totalorder %v2567_v59, 2 }
 0xb7c   : > { %v6453_v47 = vsel %vm2607_vm12, 1.0, %v5862_v7  ;;  %v2568_v63 = vsel %vm2556_vm8, 3, %v2564_v62  ;;  %5699 = vrot.lane.b32.xlu0 %v5698_v60, %s5865_s4  ;;  %v4905_v42 = vsel %vm2583_vm10, 1.0, %v5862_v7  ;;  %v4901_v6 = vsel %vm2571_vm9, 1.0, %v5862_v7 }
 0xb7d   : > { %vm2572_vm13 = vcmp.eq.s32.totalorder %v2568_v63, 0  ;;  %vm2584_vm14 = vcmp.eq.s32.totalorder %v2568_v63, 1  ;;  %vm2596_vm15 = vcmp.eq.s32.totalorder %v2568_v63, 2  ;;  %vm2608_vm0 = vcmp.eq.s32.totalorder %v2568_v63, 3 }
 0xb7e   : > { %v6455_v5 = vsel %vm2608_vm0, 1.0, %v5862_v7  ;;  %v4906_v44 = vsel %vm2584_vm14, 1.0, %v5862_v7  ;;  %v4902_v8 = vsel %vm2572_vm13, 1.0, %v5862_v7  ;;  %v4910_v11 = vsel %vm2596_vm15, 1.0, %v5862_v7 }
 0xb7f   : > { %v5708_v9 = vpack.i.bf16 %v4906_v44, %v4905_v42  ;;  %v5703_v10 = vpack.i.bf16 %v4902_v8, %v4901_v6  ;;  %v4909_v12 = vsel %vm2595_vm4, 1.0, %v5862_v7  ;;  %vm5871_vm10 = vmmov (!%p4986_p6), 0  }
 0xb80   : > { %v5713_v13 = vpack.i.bf16 %v4910_v11, %v4909_v12  ;;  %vm4543_vm12 = vcmask (!%p4986_p6), 1041409   ;;  %vm4620_vm13 = vcmask (!%p4986_p6), 17408  }
 0xb81   : > { %5709 = vrot.lane.b32.xlu0 %v5708_v9, %s5863_s3  ;;  %5704 = vrot.lane.b32.xlu1 %v5703_v10, %s5864_s22 }
 0xb85   : > { %3081 = vrot.lane.b32.xlu0 %v6376_v37, %s5865_s4  ;;  %5714 = vrot.lane.b32.xlu1 %v5713_v13, %s5865_s4 }
 0xb89   : > { %3085 = vrot.lane.b32.xlu0 %v6388_v50, %s5865_s4  ;;  %3083 = vrot.lane.b32.xlu1 %v6372_v43, %s5865_s4 }
 0xb8d   : > { %3384 = vrot.lane.b32.xlu0 %v6376_v37, %s5863_s3  ;;  %3087 = vrot.lane.b32.xlu1 %v6384_v45, %s5865_s4 }
 0xb91   : > { %3388 = vrot.lane.b32.xlu0 %v6388_v50, %s5863_s3  ;;  %3386 = vrot.lane.b32.xlu1 %v6372_v43, %s5863_s3 }
 0xb95   : > { %3687 = vrot.lane.b32.xlu0 %v6376_v37, %s5864_s22  ;;  %3390 = vrot.lane.b32.xlu1 %v6384_v45, %s5863_s3 }
 0xb99   : > { %3691 = vrot.lane.b32.xlu0 %v6388_v50, %s5864_s22  ;;  %3689 = vrot.lane.b32.xlu1 %v6372_v43, %s5864_s22 }
 0xb9d   : > { %3990 = vrot.lane.b32.xlu0 %v6376_v37, %s5866_s0  ;;  %3693 = vrot.lane.b32.xlu1 %v6384_v45, %s5864_s22 }
 0xba1   : > { %3994 = vrot.lane.b32.xlu0 %v6388_v50, %s5866_s0  ;;  %3992 = vrot.lane.b32.xlu1 %v6372_v43, %s5866_s0 }
 0xba5   : > { %3996 = vrot.lane.b32.xlu1 %v6384_v45, %s5866_s0 }
 0xbea   : > { %v5695_v14 = vpop.permute.xlu1 %5694  ;;  %v5690_v17 = vpop.permute.xlu0 %5689 }
 0xbeb   : > { %v5697_v19 = vunpack.i.h.bf16 %v5695_v14  ;;  %v5696_v20 = vunpack.i.l.bf16 %v5695_v14  ;;  %v5692_v21 = vunpack.i.h.bf16 %v5690_v17  ;;  %v5691_v23 = vunpack.i.l.bf16 %v5690_v17 }
 0xbed   : > { %v2667_v37 = vsel %vm2665_vm11, %v5692_v21, %v5697_v19  ;;  %v2666_v27 = vsel %vm2665_vm11, %v5691_v23, %v5696_v20 }
 0xbee   : > { %v5700_v0 = vpop.permute.xlu0 %5699 }
 0xbef   : > { %v5702_v24 = vunpack.i.h.bf16 %v5700_v0  ;;  %v5701_v25 = vunpack.i.l.bf16 %v5700_v0 }
 0xbf1   : > { %v2670_v50 = vsel %vm1020_vm3, %v2666_v27, %v5701_v25  ;;  %v2671_v43 = vsel %vm1020_vm3, %v2667_v37, %v5702_v24 }
 0xbf2   : > { %v6490_v45 = vsel %vm2674_vm5, %v2670_v50, %v6440_v39  ;;  %v6494_v38 = vsel %vm2674_vm5, %v2671_v43, %v6436_v15 }
 0xbf3   : > { %v5705_v29 = vpop.permute.xlu1 %5704  ;;  %v5710_v30 = vpop.permute.xlu0 %5709  ;;  %v2873_v7 = vmul.f32 %v6412_v2, %v6490_v45  ;;  %v2874_v31 = vmul.f32 %v6410_v48, %v6494_v38 }
 0xbf4   : > { %v5707_v33 = vunpack.i.h.bf16 %v5705_v29  ;;  %v5706_v34 = vunpack.i.l.bf16 %v5705_v29  ;;  %v5712_v35 = vunpack.i.h.bf16 %v5710_v30  ;;  %v5711_v36 = vunpack.i.l.bf16 %v5710_v30 }
 0xbf5   : > { %5363 = vmatprep.mubr.msk.f32.mxu1 %vm1205_vm6, %v2873_v7 }
 0xbf6   : > { %5364 = vmatmul.mubr.msk.f32.vlgmr.msra.gmra.mrb[30].mxu1 %vm1205_vm6, %v2874_v31  ;;  %v2669_v41 = vsel %vm2665_vm11, %v5707_v33, %v5712_v35  ;;  %v2668_v2 = vsel %vm2665_vm11, %v5706_v34, %v5711_v36 }
 0xbf7   : > { %v5715_v39 = vpop.permute.xlu1 %5714  ;;  %5380 = vmatpush3.msk.msra.mxu1 %vm749_vm2, %v6350_v16  ;;  %v3082_v56 = vpop.permute.xlu0 %3081 }
 0xbf8   : > { %v5717_v15 = vunpack.i.h.bf16 %v5715_v39  ;;  %v5716_v40 = vunpack.i.l.bf16 %v5715_v39 }
 0xbfa   : > { %v2672_v48 = vsel %vm1020_vm3, %v2668_v2, %v5716_v40  ;;  %v2673_v51 = vsel %vm1020_vm3, %v2669_v41, %v5717_v15 }
 0xbfb   : > { %v6510_v52 = vsel %vm2674_vm5, %v2672_v48, %v6453_v47  ;;  %v6514_v53 = vsel %vm2674_vm5, %v2673_v51, %v6455_v5  ;;  %v3084_v58 = vpop.permute.xlu1 %3083  ;;  %v3086_v59 = vpop.permute.xlu0 %3085  ;;  %v6543_v47 = vrot.slane %v6357_v18, %v2336_v1 }
 0xbfc   : > { %v2875_v54 = vmul.f32 %v6416_v4, %v6510_v52  ;;  %v2876_v55 = vmul.f32 %v6414_v3, %v6514_v53  ;;  %v2982_v3 = vld [vmem:[%s6815_s13] sm:$0xff]  ;;  %v2983_v4 = vld [vmem:[%s6815_s13 + $0x8] sm:$0xff] }
 0xbfd   : > { %v6532_v62 = vpack.c.bf16 %v2983_v4, %v2982_v3 }
 0xbfe   : > { %5366 = vmatprep.mubr.msk.f32.mxu1 %vm1205_vm6, %v2875_v54 }
 0xbff   : > { %5367 = vmatmul.mubr.msk.f32.gmra.mrb[32].mxu1 %vm1205_vm6, %v2876_v55  ;;  %v3088_v60 = vpop.permute.xlu1 %3087  ;;  %5577 = vmatprep.subr.bf16.mxu0 %v6532_v62  ;;  %v3385_v23 = vpop.permute.xlu0 %3384 }
 0xc00   : > { %5381 = vmatprep.mubr.msk.f32.mxu1 %vm2665_vm11, %v3082_v56  ;;  %5585 = vmatprep.subr.bf16.mxu1 %v6532_v62 }
 0xc01   : > { %5579 = vmatpush3.bf16.msra.mxu0 %v6532_v62 }
 0xc02   : > { %5581 = vmatprep.subr.bf16.mxu0 %v6443_v57 }
 0xc03   : > { %5382 = vmatmul.mubr.msk.f32.vlgmr.msra.gmra.mrb[34].mxu1 %vm2665_vm11, %v3084_v58  ;;  %v3387_v24 = vpop.permute.xlu1 %3386  ;;  %v3389_v25 = vpop.permute.xlu0 %3388 }
 0xc04   : > { %5384 = vmatprep.mubr.msk.f32.mxu1 %vm2665_vm11, %v3086_v59  ;;  %5587 = vmatpush3.bf16.msra.mxu1 %v6532_v62 }
 0xc05   : > { %5589 = vmatprep.subr.bf16.mxu1 %v6443_v57 }
 0xc07   : > { %5385 = vmatmul.mubr.msk.f32.gmra.mrb[36].mxu1 %vm2665_vm11, %v3088_v60  ;;  %v3391_v37 = vpop.permute.xlu1 %3390  ;;  %v3688_v60 = vpop.permute.xlu0 %3687 }
 0xc0b   : > { %v3690_v4 = vpop.permute.xlu1 %3689 }
 0xcc9   : > { %v5365_v63 = vpop.f32.mrb[30].mxu1 }
 0xcca   : > { %v2965_v42 = vadd.f32 %v5365_v63, %v6543_v47  ;;  %v2959_v5 = vpop.f32.mrb[31].mxu1  ;;  %v3692_v63 = vpop.permute.xlu0 %3691 }
 0xccb   : > { %v2960_v44 = vadd.f32 %v2959_v5, %v6543_v47 }
 0xccc   : > { %v2979_v8 = vmul.f32 %v2965_v42, %v6494_v38  ;;  %v3694_v42 = vpop.permute.xlu1 %3693 }
 0xccd   : > { %v2978_v6 = vmul.f32 %v2960_v44, %v6490_v45 }
 0xccf   : > { %5373 = vmatprep.mubr.msk.f32.mxu0 %vm1205_vm6, %v2978_v6 }
 0xcd0   : > { %5374 = vmatmul.mubr.msk.f32.vlgmr.msra.gmra.mrb[28].mxu0 %vm1205_vm6, %v2979_v8 }
 0xcd1   : > { %5583 = vmatpush3.bf16.msra.mxu0 %v6443_v57 }
 0xcd2   : > { %v5368_v61 = vpop.f32.mrb[32].mxu1  ;;  %5407 = vmatprep.subr.msk.mxu0 %vm749_vm2, %v6350_v16 }
 0xcd3   : > { %v2975_v1 = vadd.f32 %v5368_v61, %v6543_v47  ;;  %v2969_v18 = vpop.f32.mrb[33].mxu1 }
 0xcd4   : > { %v2970_v9 = vadd.f32 %v2969_v18, %v6543_v47 }
 0xcd5   : > { %v2981_v12 = vmul.f32 %v2975_v1, %v6514_v53 }
 0xcd6   : > { %v2980_v10 = vmul.f32 %v2970_v9, %v6510_v52  ;;  %v5383_v11 = vpop.f32.mrb[34].mxu1 }
 0xcd7   : > { %v3163_v13 = vpop.f32.mrb[35].mxu1  ;;  %v3183_v19 = vmul.f32 %v5383_v11, %v6494_v38 }
 0xcd8   : > { %v3182_v14 = vmul.f32 %v3163_v13, %v6490_v45  ;;  %5376 = vmatprep.mubr.msk.f32.mxu0 %vm1205_vm6, %v2980_v10 }
 0xcd9   : > { %5377 = vmatmul.mubr.msk.f32.gmra.mrb[30].mxu0 %vm1205_vm6, %v2981_v12 }
 0xcda   : > { %v5386_v17 = vpop.f32.mrb[36].mxu1  ;;  %5391 = vmatprep.mubr.msk.f32.mxu0 %vm1205_vm6, %v3182_v14 }
 0xcdb   : > { %v3173_v20 = vpop.f32.mrb[37].mxu1  ;;  %v3185_v0 = vmul.f32 %v5386_v17, %v6514_v53 }
 0xcdc   : > { %v3184_v21 = vmul.f32 %v3173_v20, %v6510_v52 }
 0xcdd   : > { %5392 = vmatmul.mubr.msk.f32.vlgmr.msra.gmra.mrb[32].mxu0 %vm1205_vm6, %v3183_v19 }
 0xcde   : > { %5394 = vmatprep.mubr.msk.f32.mxu0 %vm1205_vm6, %v3184_v21  ;;  %5408 = vmatpush3.msk.msra.mxu0 %vm749_vm2, %v6350_v16 }
 0xcdf   : > { %5593 = vmatprep.subr.bf16.mxu0 %v6532_v62 }
 0xce1   : > { %5395 = vmatmul.mubr.msk.f32.gmra.mrb[34].mxu0 %vm1205_vm6, %v3185_v0 }
 0xce2   : > { %5409 = vmatprep.mubr.msk.f32.mxu0 %vm2665_vm11, %v3385_v23 }
 0xce5   : > { %5410 = vmatmul.mubr.msk.f32.vlgmr.msra.gmra.mrb[36].mxu0 %vm2665_vm11, %v3387_v24 }
 0xce6   : > { %5412 = vmatprep.mubr.msk.f32.mxu0 %vm2665_vm11, %v3389_v25  ;;  %5595 = vmatpush3.bf16.msra.mxu0 %v6532_v62 }
 0xce7   : > { %5597 = vmatprep.subr.bf16.mxu0 %v6443_v57 }
 0xce9   : > { %5413 = vmatmul.mubr.msk.f32.gmra.mrb[38].mxu0 %vm2665_vm11, %v3391_v37 }
 0xda3   : > { %v6577_v27 = vpop.f32.mrb[28].mxu0 }
 0xda4   : > { %v6579_v50 = vpop.f32.mrb[29].mxu0 }
 0xdac   : > { %v6581_v43 = vpop.f32.mrb[30].mxu0 }
 0xdad   : > { %v6583_v29 = vpop.f32.mrb[31].mxu0 }
 0xdb0   : > { %v5393_v30 = vpop.f32.mrb[32].mxu0 }
 0xdb1   : > { %v3270_v7 = vadd.f32 %v5393_v30, %v6543_v47  ;;  %v3264_v31 = vpop.f32.mrb[33].mxu0 }
 0xdb2   : > { %v3265_v33 = vadd.f32 %v3264_v31, %v6543_v47 }
 0xdb3   : > { %v3284_v36 = vmul.f32 %v3270_v7, %v6494_v38  ;;  %v3991_v7 = vpop.permute.xlu0 %3990 }
 0xdb4   : > { %v3283_v34 = vmul.f32 %v3265_v33, %v6490_v45  ;;  %v5396_v35 = vpop.f32.mrb[34].mxu0  ;;  %v3993_v33 = vpop.permute.xlu1 %3992 }
 0xdb5   : > { %v3280_v39 = vadd.f32 %v5396_v35, %v6543_v47  ;;  %v3274_v15 = vpop.f32.mrb[35].mxu0 }
 0xdb6   : > { %v3275_v40 = vadd.f32 %v3274_v15, %v6543_v47  ;;  %5401 = vmatprep.mubr.msk.f32.mxu1 %vm1205_vm6, %v3283_v34 }
 0xdb7   : > { %5402 = vmatmul.mubr.msk.f32.vlgmr.msra.gmra.mrb[38].mxu1 %vm1205_vm6, %v3284_v36  ;;  %v3286_v48 = vmul.f32 %v3280_v39, %v6514_v53  ;;  %v3995_v34 = vpop.permute.xlu0 %3994 }
 0xdb8   : > { %v3285_v41 = vmul.f32 %v3275_v40, %v6510_v52  ;;  %v5411_v2 = vpop.f32.mrb[36].mxu0  ;;  %5591 = vmatpush3.bf16.msra.mxu1 %v6443_v57  ;;  %v3997_v35 = vpop.permute.xlu1 %3996 }
 0xdb9   : > { %v3466_v51 = vpop.f32.mrb[37].mxu0  ;;  %5435 = vmatprep.subr.msk.mxu1 %vm749_vm2, %v6350_v16  ;;  %v3486_v56 = vmul.f32 %v5411_v2, %v6494_v38 }
 0xdba   : > { %v3485_v54 = vmul.f32 %v3466_v51, %v6490_v45  ;;  %5404 = vmatprep.mubr.msk.f32.mxu1 %vm1205_vm6, %v3285_v41 }
 0xdbb   : > { %5405 = vmatmul.mubr.msk.f32.gmra.mrb[40].mxu1 %vm1205_vm6, %v3286_v48 }
 0xdbc   : > { %v5414_v55 = vpop.f32.mrb[38].mxu0  ;;  %5419 = vmatprep.mubr.msk.f32.mxu1 %vm1205_vm6, %v3485_v54 }
 0xdbd   : > { %v3476_v58 = vpop.f32.mrb[39].mxu0  ;;  %v3488_v3 = vmul.f32 %v5414_v55, %v6514_v53 }
 0xdbe   : > { %v3487_v59 = vmul.f32 %v3476_v58, %v6510_v52 }
 0xdbf   : > { %5420 = vmatmul.mubr.msk.f32.vlgmr.msra.gmra.mrb[42].mxu1 %vm1205_vm6, %v3486_v56 }
 0xdc0   : > { %5422 = vmatprep.mubr.msk.f32.mxu1 %vm1205_vm6, %v3487_v59  ;;  %5436 = vmatpush3.msk.msra.mxu1 %vm749_vm2, %v6350_v16 }
 0xdc1   : > { %5601 = vmatprep.subr.bf16.mxu1 %v6532_v62 }
 0xdc3   : > { %5423 = vmatmul.mubr.msk.f32.gmra.mrb[44].mxu1 %vm1205_vm6, %v3488_v3 }
 0xdc4   : > { %5437 = vmatprep.mubr.msk.f32.mxu1 %vm2665_vm11, %v3688_v60 }
 0xdc7   : > { %5438 = vmatmul.mubr.msk.f32.vlgmr.msra.gmra.mrb[46].mxu1 %vm2665_vm11, %v3690_v4 }
 0xdc8   : > { %5440 = vmatprep.mubr.msk.f32.mxu1 %vm2665_vm11, %v3692_v63  ;;  %5603 = vmatpush3.bf16.msra.mxu1 %v6532_v62 }
 0xdc9   : > { %5605 = vmatprep.subr.bf16.mxu1 %v6443_v57 }
 0xdcb   : > { %5441 = vmatmul.mubr.msk.f32.gmra.mrb[48].mxu1 %vm2665_vm11, %v3694_v42 }
 0xe8a   : > { %v5403_v5 = vpop.f32.mrb[38].mxu1 }
 0xe8b   : > { %4299 = vrot.lane.b32.xlu1 %v5403_v5, %s5860_s16  ;;  %v3365_v44 = vpop.f32.mrb[39].mxu1 }
 0xe8c   : > { %4297 = vrot.lane.b32.xlu0 %v3365_v44, %s5860_s16 }
 0xe8e   : > { %v5406_v6 = vpop.f32.mrb[40].mxu1 }
 0xe8f   : > { %4303 = vrot.lane.b32.xlu1 %v5406_v6, %s5860_s16  ;;  %v3375_v8 = vpop.f32.mrb[41].mxu1 }
 0xe90   : > { %4301 = vrot.lane.b32.xlu0 %v3375_v8, %s5860_s16  ;;  %s6850_s16 = sld [smem:[#allocation20_spill]] (!%p4986_p6) }
 0xe92   : > { %v5421_v61 = vpop.f32.mrb[42].mxu1 }
 0xe93   : > { %v3573_v1 = vadd.f32 %v5421_v61, %v6543_v47  ;;  %v3567_v18 = vpop.f32.mrb[43].mxu1 }
 0xe94   : > { %v3568_v9 = vadd.f32 %v3567_v18, %v6543_v47 }
 0xe95   : > { %v3587_v12 = vmul.f32 %v3573_v1, %v6494_v38 }
 0xe96   : > { %v3586_v10 = vmul.f32 %v3568_v9, %v6490_v45  ;;  %v5424_v11 = vpop.f32.mrb[44].mxu1 }
 0xe97   : > { %v3583_v13 = vadd.f32 %v5424_v11, %v6543_v47  ;;  %v3577_v14 = vpop.f32.mrb[45].mxu1 }
 0xe98   : > { %v3578_v17 = vadd.f32 %v3577_v14, %v6543_v47  ;;  %5429 = vmatprep.mubr.msk.f32.mxu0 %vm1205_vm6, %v3586_v10 }
 0xe99   : > { %5430 = vmatmul.mubr.msk.f32.vlgmr.msra.gmra.mrb[40].mxu0 %vm1205_vm6, %v3587_v12  ;;  %v3589_v21 = vmul.f32 %v3583_v13, %v6514_v53 }
 0xe9a   : > { %v3588_v19 = vmul.f32 %v3578_v17, %v6510_v52  ;;  %v5439_v20 = vpop.f32.mrb[46].mxu1  ;;  %5599 = vmatpush3.bf16.msra.mxu0 %v6443_v57 }
 0xe9b   : > { %v3769_v23 = vpop.f32.mrb[47].mxu1  ;;  %5463 = vmatprep.subr.msk.mxu0 %vm749_vm2, %v6350_v16  ;;  %v3789_v25 = vmul.f32 %v5439_v20, %v6494_v38 }
 0xe9c   : > { %v3788_v0 = vmul.f32 %v3769_v23, %v6490_v45  ;;  %5432 = vmatprep.mubr.msk.f32.mxu0 %vm1205_vm6, %v3588_v19 }
 0xe9d   : > { %5433 = vmatmul.mubr.msk.f32.gmra.mrb[42].mxu0 %vm1205_vm6, %v3589_v21 }
 0xe9e   : > { %v5442_v24 = vpop.f32.mrb[48].mxu1  ;;  %5447 = vmatprep.mubr.msk.f32.mxu0 %vm1205_vm6, %v3788_v0 }
 0xe9f   : > { %v3779_v37 = vpop.f32.mrb[49].mxu1  ;;  %v3791_v31 = vmul.f32 %v5442_v24, %v6514_v53 }
 0xea0   : > { %v3790_v30 = vmul.f32 %v3779_v37, %v6510_v52 }
 0xea1   : > { %5448 = vmatmul.mubr.msk.f32.vlgmr.msra.gmra.mrb[44].mxu0 %vm1205_vm6, %v3789_v25 }
 0xea2   : > { %5450 = vmatprep.mubr.msk.f32.mxu0 %vm1205_vm6, %v3790_v30  ;;  %5464 = vmatpush3.msk.msra.mxu0 %vm749_vm2, %v6350_v16 }
 0xea3   : > { %5609 = vmatprep.subr.bf16.mxu0 %v6532_v62 }
 0xea5   : > { %5451 = vmatmul.mubr.msk.f32.gmra.mrb[46].mxu0 %vm1205_vm6, %v3791_v31 }
 0xea6   : > { %5465 = vmatprep.mubr.msk.f32.mxu0 %vm2665_vm11, %v3991_v7 }
 0xea9   : > { %5466 = vmatmul.mubr.msk.f32.vlgmr.msra.gmra.mrb[48].mxu0 %vm2665_vm11, %v3993_v33 }
 0xeaa   : > { %5468 = vmatprep.mubr.msk.f32.mxu0 %vm2665_vm11, %v3995_v34  ;;  %5611 = vmatpush3.bf16.msra.mxu0 %v6532_v62 }
 0xead   : > { %5469 = vmatmul.mubr.msk.f32.gmra.mrb[50].mxu0 %vm2665_vm11, %v3997_v35 }
 0xefd   : > { %v4300_v25 = vpop.permute.xlu1 %4299 }
 0xefe   : > { %v4298_v37 = vpop.permute.xlu0 %4297 }
 0xf01   : > { %v4304_v30 = vpop.permute.xlu1 %4303 }
 0xf6c   : > { %v5431_v16 = vpop.f32.mrb[40].mxu0 }
 0xf6d   : > { %4315 = vrot.lane.b32.xlu1 %v5431_v16, %s5867_s17  ;;  %v3668_v36 = vpop.f32.mrb[41].mxu0 }
 0xf6e   : > { %4313 = vrot.lane.b32.xlu0 %v3668_v36, %s5867_s17 }
 0xf70   : > { %v5434_v39 = vpop.f32.mrb[42].mxu0 }
 0xf71   : > { %4319 = vrot.lane.b32.xlu1 %v5434_v39, %s5867_s17  ;;  %v3678_v15 = vpop.f32.mrb[43].mxu0  ;;  %v4358_v39 = vsel %vm2665_vm11, %v6577_v27, %v4300_v25 }
 0xf72   : > { %4317 = vrot.lane.b32.xlu0 %v3678_v15, %s5867_s17  ;;  %v4357_v15 = vsel %vm2665_vm11, %v6579_v50, %v4298_v37 }
 0xf74   : > { %v5449_v40 = vpop.f32.mrb[44].mxu0 }
 0xf75   : > { %v3876_v41 = vadd.f32 %v5449_v40, %v6543_v47  ;;  %v3870_v2 = vpop.f32.mrb[45].mxu0 }
 0xf76   : > { %v3871_v48 = vadd.f32 %v3870_v2, %v6543_v47 }
 0xf77   : > { %v3890_v54 = vmul.f32 %v3876_v41, %v6494_v38 }
 0xf78   : > { %v3889_v62 = vmul.f32 %v3871_v48, %v6490_v45  ;;  %v5452_v51 = vpop.f32.mrb[46].mxu0 }
 0xf79   : > { %v3886_v55 = vadd.f32 %v5452_v51, %v6543_v47  ;;  %v3880_v56 = vpop.f32.mrb[47].mxu0 }
 0xf7a   : > { %v3881_v58 = vadd.f32 %v3880_v56, %v6543_v47  ;;  %5457 = vmatprep.mubr.msk.f32.mxu1 %vm1205_vm6, %v3889_v62  ;;  %v4360_v62 = vsel %vm2665_vm11, %v6581_v43, %v4304_v30 }
 0xf7b   : > { %5458 = vmatmul.mubr.msk.f32.vlgmr.msra.gmra.mrb[50].mxu1 %vm1205_vm6, %v3890_v54  ;;  %v3892_v3 = vmul.f32 %v3886_v55, %v6514_v53 }
 0xf7c   : > { %v3891_v59 = vmul.f32 %v3881_v58, %v6510_v52  ;;  %v5467_v60 = vpop.f32.mrb[48].mxu0  ;;  %5607 = vmatpush3.bf16.msra.mxu1 %v6443_v57 }
 0xf7d   : > { %v4072_v4 = vpop.f32.mrb[49].mxu0  ;;  %v4092_v5 = vmul.f32 %v5467_v60, %v6494_v38 }
 0xf7e   : > { %v4091_v63 = vmul.f32 %v4072_v4, %v6490_v45  ;;  %5460 = vmatprep.mubr.msk.f32.mxu1 %vm1205_vm6, %v3891_v59 }
 0xf7f   : > { %5461 = vmatmul.mubr.msk.f32.gmra.mrb[52].mxu1 %vm1205_vm6, %v3892_v3 }
 0xf80   : > { %v5470_v42 = vpop.f32.mrb[50].mxu0  ;;  %5475 = vmatprep.mubr.msk.f32.mxu1 %vm1205_vm6, %v4091_v63 }
 0xf81   : > { %v4082_v44 = vpop.f32.mrb[51].mxu0  ;;  %v4094_v57 = vmul.f32 %v5470_v42, %v6514_v53 }
 0xf82   : > { %v4093_v6 = vmul.f32 %v4082_v44, %v6510_v52 }
 0xf83   : > { %5476 = vmatmul.mubr.msk.f32.vlgmr.msra.gmra.mrb[54].mxu1 %vm1205_vm6, %v4092_v5 }
 0xf84   : > { %5478 = vmatprep.mubr.msk.f32.mxu1 %vm1205_vm6, %v4093_v6  ;;  %v4419_v6 = vstv %s6686_s19 }
 0xf87   : > { %5479 = vmatmul.mubr.msk.f32.gmra.mrb[56].mxu1 %vm1205_vm6, %v4094_v57 }
 0xfdf   : > { %v4316_v7 = vpop.permute.xlu1 %4315 }
 0xfe0   : > { %v4362_v40 = vsel %vm1020_vm3, %v4358_v39, %v4316_v7 }
 0xfe3   : > { %v4320_v31 = vpop.permute.xlu1 %4319 }
 0xfe4   : > { %v4364_v50 = vsel %vm1020_vm3, %v4360_v62, %v4320_v31 }
0x104e   : > { %v5459_v8 = vpop.f32.mrb[50].mxu1 }
0x104f   : > { %4331 = vrot.lane.b32.xlu1 %v5459_v8, %s5868_s26  ;;  %v3971_v61 = vpop.f32.mrb[51].mxu1 }
0x1050   : > { %4329 = vrot.lane.b32.xlu0 %v3971_v61, %s5868_s26  ;;  %v4414_v61 = vstv %s6690_s30 }
0x1052   : > { %v5462_v1 = vpop.f32.mrb[52].mxu1 }
0x1053   : > { %4335 = vrot.lane.b32.xlu1 %v5462_v1, %s5868_s26  ;;  %v3981_v18 = vpop.f32.mrb[53].mxu1  ;;  %v4428_v1 = vstv %s6692_s18 }
0x1054   : > { %4333 = vrot.lane.b32.xlu0 %v3981_v18, %s5868_s26 }
0x1056   : > { %v5477_v9 = vpop.f32.mrb[54].mxu1 }
0x1057   : > { %v4179_v10 = vadd.f32 %v5477_v9, %v6543_v47  ;;  %v4173_v11 = vpop.f32.mrb[55].mxu1 }
0x1058   : > { %v4174_v12 = vadd.f32 %v4173_v11, %v6543_v47 }
0x1059   : > { %v4193_v17 = vmul.f32 %v4179_v10, %v6494_v38 }
0x105a   : > { %v4192_v13 = vmul.f32 %v4174_v12, %v6490_v45  ;;  %v5480_v14 = vpop.f32.mrb[56].mxu1 }
0x105b   : > { %v4189_v19 = vadd.f32 %v5480_v14, %v6543_v47  ;;  %v4183_v20 = vpop.f32.mrb[57].mxu1 }
0x105c   : > { %v4184_v21 = vadd.f32 %v4183_v20, %v6543_v47  ;;  %5485 = vmatprep.mubr.msk.f32.mxu0 %vm1205_vm6, %v4192_v13 }
0x105d   : > { %5486 = vmatmul.mubr.msk.f32.vlgmr.msra.gmra.mrb[52].mxu0 %vm1205_vm6, %v4193_v17  ;;  %v4195_v0 = vmul.f32 %v4189_v19, %v6514_v53 }
0x105e   : > { %v4194_v23 = vmul.f32 %v4184_v21, %v6510_v52  ;;  %v4302_v52 = vpop.permute.xlu0 %4301 }
0x105f   : > { %v4359_v27 = vsel %vm2665_vm11, %v6583_v29, %v4302_v52  ;;  %vm4388_vm11 = vcmask 1040384  }
0x1060   : > { %5488 = vmatprep.mubr.msk.f32.mxu0 %vm1205_vm6, %v4194_v23  ;;  %v4437_v23 = vstv %s6709_s29 }
0x1061   : > { %5489 = vmatmul.mubr.msk.f32.gmra.mrb[54].mxu0 %vm1205_vm6, %v4195_v0 }
0x1062   : > { %v4314_v53 = vpop.permute.xlu0 %4313 }
0x1063   : > { %v4361_v41 = vsel %vm1020_vm3, %v4357_v15, %v4314_v53 }
0x1066   : > { %v4318_v33 = vpop.permute.xlu0 %4317 }
0x1067   : > { %v4363_v56 = vsel %vm1020_vm3, %v4359_v27, %v4318_v33 }
0x10c1   : > { %v4332_v34 = vpop.permute.xlu1 %4331 }
0x10c2   : > { %v4330_v35 = vpop.permute.xlu0 %4329  ;;  %v4366_v2 = vsel %vm2674_vm5, %v4362_v40, %v4332_v34 }
0x10c3   : > { %v4365_v51 = vsel %vm2674_vm5, %v4361_v41, %v4330_v35 }
0x10c5   : > { %v4336_v16 = vpop.permute.xlu1 %4335 }
0x10c6   : > { %v4334_v36 = vpop.permute.xlu0 %4333  ;;  %v4368_v43 = vsel %vm2674_vm5, %v4364_v50, %v4336_v16 }
0x10c7   : > { %v4367_v29 = vsel %vm2674_vm5, %v4363_v56, %v4334_v36 }
0x1130   : > { %v5487_v45 = vpop.f32.mrb[52].mxu0 }
0x1131   : > { %4347 = vrot.lane.b32.xlu1 %v5487_v45, %s5869_s6  ;;  %v4274_v38 = vpop.f32.mrb[53].mxu0 }
0x1132   : > { %4345 = vrot.lane.b32.xlu0 %v4274_v38, %s5869_s6 }
0x1134   : > { %v5490_v24 = vpop.f32.mrb[54].mxu0 }
0x1135   : > { %4351 = vrot.lane.b32.xlu1 %v5490_v24, %s5869_s6  ;;  %v4284_v47 = vpop.f32.mrb[55].mxu0 }
0x1136   : > { %4349 = vrot.lane.b32.xlu0 %v4284_v47, %s5869_s6 }
0x11a3   : > { %v4348_v48 = vpop.permute.xlu1 %4347 }
0x11a4   : > { %v4370_v54 = vsel %vm1205_vm6, %v4366_v2, %v4348_v48  ;;  %v4346_v55 = vpop.permute.xlu0 %4345 }
0x11a5   : > { %v4374_v58 = vadd.f32 %v4370_v54, %v6317_v28  ;;  %v4369_v59 = vsel %vm1205_vm6, %v4365_v51, %v4346_v55 }
0x11a6   : > { %v4373_v60 = vadd.f32 %v4369_v59, %v6313_v26 }
0x11a7   : > { %v4390_v3 = vrot.slane %v4374_v58, 7  ;;  %v4403_v4 = vrot.slane %v4374_v58, 6  ;;  %v4352_v63 = vpop.permute.xlu1 %4351  ;;  %v4430_v21 = vmul.f32 %v4428_v1, %v4374_v58 }
0x11a8   : > { %v4389_v42 = vrot.slane %v4373_v60, 7  ;;  %v4402_v5 = vrot.slane %v4373_v60, 6  ;;  %v4372_v28 = vsel %vm1205_vm6, %v4368_v43, %v4352_v63  ;;  %v4350_v44 = vpop.permute.xlu0 %4349  ;;  %v4429_v45 = vmul.f32 %v4428_v1, %v4373_v60 }
0x11a9   : > { %v4376_v57 = vadd.f32 %v4372_v28, %v6332_v32  ;;  %v4371_v8 = vsel %vm1205_vm6, %v4367_v29, %v4350_v44 }
0x11aa   : > { %v4399_v26 = vsel %vm4388_vm11, 0.0, %v4389_v42  ;;  %v4412_v18 = vsel %vm4401_vm7, 0.0, %v4402_v5  ;;  %v4375_v9 = vadd.f32 %v4371_v8, %v6329_v22  ;;  %v4391_v10 = vsel %vm4388_vm11, %v4389_v42, %v4390_v3 }
0x11ab   : > { %v4393_v11 = vrot.slane %v4376_v57, 7  ;;  %v4406_v12 = vrot.slane %v4376_v57, 6  ;;  %v4404_v13 = vsel %vm4401_vm7, %v4402_v5, %v4403_v4  ;;  %v4421_v14 = vmul.f32 %v4419_v6, %v4391_v10 }
0x11ac   : > { %v4392_v17 = vrot.slane %v4375_v9, 7  ;;  %v4405_v32 = vrot.slane %v4375_v9, 6  ;;  %v4416_v19 = vmul.f32 %v4414_v61, %v4404_v13  ;;  %v4415_v20 = vmul.f32 %v4414_v61, %v4412_v18 }
0x11ad   : > { %v4420_v0 = vmul.f32 %v4419_v6, %v4399_v26  ;;  %v4431_v35 = vmul.f32 %v4428_v1, %v4375_v9  ;;  %v4432_v39 = vmul.f32 %v4428_v1, %v4376_v57 }
0x11ae   : > { %v4400_v38 = vsel %vm4388_vm11, 0.0, %v4392_v17  ;;  %v4413_v24 = vsel %vm4401_vm7, 0.0, %v4405_v32  ;;  %v4425_v22 = vadd.f32 %v4421_v14, %v4416_v19  ;;  %v4394_v47 = vsel %vm4388_vm11, %v4392_v17, %v4393_v11 }
0x11af   : > { %v4424_v25 = vadd.f32 %v4420_v0, %v4415_v20  ;;  %v4417_v37 = vmul.f32 %v4414_v61, %v4413_v24  ;;  %v4422_v30 = vmul.f32 %v4419_v6, %v4400_v38  ;;  %v4407_v52 = vsel %vm4401_vm7, %v4405_v32, %v4406_v12 }
0x11b0   : > { %v4434_v7 = vadd.f32 %v4430_v21, %v4425_v22  ;;  %v4418_v53 = vmul.f32 %v4414_v61, %v4407_v52  ;;  %v4423_v31 = vmul.f32 %v4419_v6, %v4394_v47 }
0x11b1   : > { %v4433_v33 = vadd.f32 %v4429_v45, %v4424_v25  ;;  %v4426_v34 = vadd.f32 %v4422_v30, %v4417_v37 }
0x11b2   : > { %v4439_v16 = vadd.f32 %v4437_v23, %v4434_v7  ;;  %v4427_v36 = vadd.f32 %v4423_v31, %v4418_v53 }
0x11b3   : > { %v4438_v15 = vadd.f32 %v4437_v23, %v4433_v33  ;;  %v4435_v40 = vadd.f32 %v4431_v35, %v4426_v34 }
0x11b4   : > { %v4445_v41 = vsel %vm736_vm1, %v4439_v16, 0.0  ;;  %v4436_v2 = vadd.f32 %v4432_v39, %v4427_v36 }
0x11b5   : > { %4446 = vadd.xlane.f32.xlu1 %v4445_v41  ;;  %v4442_v48 = vsel %vm736_vm1, %v4438_v15, 0.0  ;;  %v4440_v62 = vadd.f32 %v4437_v23, %v4435_v40 }
0x11b6   : > { %4443 = vadd.xlane.f32.xlu0 %v4442_v48  ;;  %v4441_v51 = vadd.f32 %v4437_v23, %v4436_v2  ;;  %v4530_v2 = vld [vmem:[%s6850_s16] sm:$0xff] (!%p4986_p6)  ;;  %v5870_v48 = vmov (!%p4986_p6), 0.0|0.0  }
0x11b7   : > { %v4448_v27 = vsel %vm736_vm1, %v4440_v62, 0.0  ;;  %5612 = vmatprep.subr.bf16.mxu0 (!%p4986_p6), %v5870_v48 }
0x11b8   : > { %v4451_v54 = vsel %vm736_vm1, %v4441_v51, 0.0 }
0x11ba   : > { %4449 = vadd.xlane.f32.xlu0 %v4448_v27  ;;  %v5872_v27 = vmov (!%p4986_p6), 0.0  }
0x11bb   : > { %5497 = vmatprep.mubr.msk.f32.mxu0 (!%p4986_p6), %vm5871_vm10, %v5872_v27 }
0x11be   : > { %4452 = vadd.xlane.f32.xlu0 %v4451_v54 }
0x1242   : > { %v4447_v55 = vpop.xlane.xlu1 %4446 }
0x1243   : > { %v4455_v50 = vmul.f32 0.05, %v4447_v55  ;;  %v4444_v56 = vpop.xlane.xlu0 %4443  ;;  %v4987_v55 = vld [vmem:[%s6851_s24] ss:$0 sm:$0xff] (!%p4986_p6) }
0x1244   : > { %v4454_v58 = vmul.f32 0.05, %v4444_v56 }
0x1245   : > { %v4459_v59 = vsub.f32 %v4439_v16, %v4455_v50 }
0x1246   : > { %v4458_v43 = vsub.f32 %v4438_v15, %v4454_v58 }
0x1247   : > { %v4450_v29 = vpop.xlane.xlu0 %4449  ;;  %v4463_v60 = vmul.f32 %v4459_v59, %v4459_v59 }
0x1248   : > { %v4456_v3 = vmul.f32 0.05, %v4450_v29  ;;  %v4462_v4 = vmul.f32 %v4458_v43, %v4458_v43 }
0x1249   : > { %v4469_v63 = vsel %vm736_vm1, %v4463_v60, 0.0 }
0x124a   : > { %v4460_v42 = vsub.f32 %v4440_v62, %v4456_v3  ;;  %4470 = vadd.xlane.f32.xlu1 %v4469_v63  ;;  %v4466_v5 = vsel %vm736_vm1, %v4462_v4, 0.0 }
0x124b   : > { %4467 = vadd.xlane.f32.xlu0 %v4466_v5  ;;  %v4453_v28 = vpop.xlane.xlu0 %4452 }
0x124c   : > { %v4457_v44 = vmul.f32 0.05, %v4453_v28  ;;  %v4464_v6 = vmul.f32 %v4460_v42, %v4460_v42 }
0x124e   : > { %v4461_v57 = vsub.f32 %v4441_v51, %v4457_v44  ;;  %v4472_v8 = vsel %vm736_vm1, %v4464_v6, 0.0  ;;  %v4532_v51 = vld [vmem:[%s6850_s16 + $0x10] sm:$0xf] (!%p4986_p6) }
0x124f   : > { %4473 = vadd.xlane.f32.xlu0 %v4472_v8 }
0x1250   : > { %v4465_v61 = vmul.f32 %v4461_v57, %v4461_v57 }
0x1252   : > { %v4475_v1 = vsel %vm736_vm1, %v4465_v61, 0.0 }
0x1253   : > { %4476 = vadd.xlane.f32.xlu1 %v4475_v1 }
0x12d7   : > { %v4471_v26 = vpop.xlane.xlu1 %4470 }
0x12d8   : > { %v4479_v18 = vmul.f32 0.05, %v4471_v26  ;;  %v4468_v9 = vpop.xlane.xlu0 %4467 }
0x12d9   : > { %v4478_v10 = vmul.f32 0.05, %v4468_v9 }
0x12da   : > { %v4483_v11 = vadd.f32 1e-05, %v4479_v18 }
0x12db   : > { %v4482_v12 = vadd.f32 1e-05, %v4478_v10 }
0x12dc   : > { %5758 = vrsqrt.f32 %v4483_v11  ;;  %v4474_v13 = vpop.xlane.xlu0 %4473 }
0x12dd   : > { %5760 = vrsqrt.f32 %v4482_v12  ;;  %v4480_v14 = vmul.f32 0.05, %v4474_v13 }
0x12df   : > { %v4484_v17 = vadd.f32 1e-05, %v4480_v14 }
0x12e0   : > { %v4477_v32 = vpop.xlane.xlu1 %4476 }
0x12e1   : > { %5762 = vrsqrt.f32 %v4484_v17  ;;  %v4481_v19 = vmul.f32 0.05, %v4477_v32 }
0x12e3   : > { %v4485_v20 = vadd.f32 1e-05, %v4481_v19 }
0x12e5   : > { %5764 = vrsqrt.f32 %v4485_v20 }
0x12e6   : > { %v5759_v21 = vpop.eup %5758 }
0x12e7   : > { %v5761_v23 = vpop.eup %5760  ;;  %v4491_v0 = vmul.f32 %v5759_v21, %v4459_v59 }
0x12e8   : > { %v4490_v45 = vmul.f32 %v5761_v23, %v4458_v43 }
0x12e9   : > { %v4499_v38 = vmul.f32 %v6278_v46, %v4491_v0 }
0x12ea   : > { %v4498_v24 = vmul.f32 %v6278_v46, %v4490_v45 }
0x12eb   : > { %v5763_v22 = vpop.eup %5762  ;;  %v4507_v47 = vadd.f32 %v6281_v49, %v4499_v38 }
0x12ec   : > { %v4506_v25 = vadd.f32 %v6281_v49, %v4498_v24  ;;  %v4492_v37 = vmul.f32 %v5763_v22, %v4460_v42 }
0x12ed   : > { %vm4511_vm3 = vcmp.gt.f32.partialorder %v4507_v47, 0.0  ;;  %v4515_v30 = vmul.f32 0.01, %v4507_v47 }
0x12ee   : > { %vm4510_vm6 = vcmp.gt.f32.partialorder %v4506_v25, 0.0  ;;  %v4514_v52 = vmul.f32 0.01, %v4506_v25  ;;  %v4500_v7 = vmul.f32 %v6278_v46, %v4492_v37 }
0x12ef   : > { %v5765_v53 = vpop.eup %5764  ;;  %v4519_v31 = vsel %vm4511_vm3, %v4507_v47, %v4515_v30 }
0x12f0   : > { %4523 = vst.msk [vmem:[#allocation2 + $0x8] sm:$0xff] %vm736_vm1, %v4519_v31  ;;  %v4518_v33 = vsel %vm4510_vm6, %v4506_v25, %v4514_v52  ;;  %v4508_v34 = vadd.f32 %v6281_v49, %v4500_v7  ;;  %v4493_v35 = vmul.f32 %v5765_v53, %v4461_v57 }
0x12f1   : > { %4522 = vst.msk [vmem:[#allocation2] sm:$0xff] %vm736_vm1, %v4518_v33 }
0x12f2   : > { %vm4512_vm8 = vcmp.gt.f32.partialorder %v4508_v34, 0.0  ;;  %v4516_v16 = vmul.f32 0.01, %v4508_v34  ;;  %v4501_v36 = vmul.f32 %v6278_v46, %v4493_v35  ;;  %v4531_v46 = vld [vmem:[%s6850_s16 + $0x8] sm:$0xff] (!%p4986_p6) }
0x12f3   : > { %4529 = sbr.rel (%p4986_p6) target bundleno = 5074 (0x13d2), region = 100 }
0x12f4   : > { %v4520_v39 = vsel %vm4512_vm8, %v4508_v34, %v4516_v16  ;;  %v4509_v15 = vadd.f32 %v6281_v49, %v4501_v36  ;;  %v5613_v49 = vpack.c.bf16 (!%p4986_p6), %v4531_v46, %v4530_v2 }
0x12f5   : > { %4524 = vst.msk [vmem:[#allocation2 + $0x10] sm:$0xff] %vm736_vm1, %v4520_v39  ;;  %v4542_v62 = vrot.slane (!%p4986_p6), %v4520_v39, 7 }
0x12f6   : > { %vm4513_vm9 = vcmp.gt.f32.partialorder %v4509_v15, 0.0  ;;  %v4517_v40 = vmul.f32 0.01, %v4509_v15  ;;  %5614 = vmatpush3.bf16.msra.mxu0 (!%p4986_p6), %v5613_v49 }
0x12f7   : > { %5495 = vmatprep.subr.mxu0 (!%p4986_p6), %v5872_v27  ;;  %v4544_v54 = vsel (!%p4986_p6), %vm4543_vm12, %v4542_v62, %v4518_v33 }
0x12f8   : > { %v4521_v41 = vsel %vm4513_vm9, %v4509_v15, %v4517_v40 }
0x12f9   : > { %4525 = vst.msk [vmem:[#allocation2 + $0x18] sm:$0xff] %vm736_vm1, %v4521_v41 }
0x12fa   : > { %5496 = vmatpush3.msk.msra.mxu0 %vm749_vm2, %v4532_v51 }
0x12fb   : > { %5498 = vmatmul.mubr.msk.f32.vlgmr.msra.gmra.mrb[0].mxu0 %vm736_vm1, %v4544_v54 }
0x13ce   : > { %v4616_v50 = vpop.f32.mrb[0].mxu0 }
0x13cf   : > { %v4617_v56 = vadd.f32 %v4987_v55, %v4616_v50  ;;  %v5499_v58 = vpop.f32.mrb[1].mxu0 }
0x13d1   : > { %4621 = vst.msk [vmem:[#allocation8] sm:$0x3] %vm4620_vm13, %v4617_v56 }
0x13d2 PF: > { %s6852_s14 = sld [smem:[#allocation13_spill]]  ;;  %s5873_s26 = smov [#allocation8]  }
0x13d3   : > { %s4631_s6 = sshll.u32 %s5873_s26, 4  ;;  %s4632_s6 = int_to_ptr.vmem [resolvable:$true] %s4631_s6 }
0x13d4   : > { %s5796_s28 = scalar_lea.vmem %s4632_s6, 32  ;;  %p5803_p1 = scmp.lt.s32.totalorder %s4632_s6, %s4632_s6 }
0x13d5   : > { %p5797_p12 = scmp.ne.s32.totalorder %s4632_s6, %s5796_s28  ;;  %p5804_p2 = scmp.lt.s32.totalorder %s5796_s28, %s5796_s28 }
0x13d7   : > { %p5805_p5 = por %p5804_p2, %p5803_p1 }
0x13d8   : > { %s6853_s20 = sadd.s32 4294967295, %s6852_s14  }
0x13d9   : > { %p6767_p8 = scmp.eq.s32.totalorder %s6853_s20, 1 }
0x13db   : > { %p5798_p13 = pnand %p5797_p12, %p6767_p8 }
0x13dd   : > { %p5799_p0 = pneg %p5798_p13 }
0x13df   : > { %p5806_p7 = pnand %p5805_p5, %p5799_p0 }
0x13e1   : > { %5809 = shalt.err (!%p5806_p7)
}
0x13e2   : > { %s6855_s19 = sld [smem:[#allocation22_spill]] }
0x13e8   : > { %s5810_s30 = scalar_lea.hbm %s6855_s19, 32 }
0x13e9   : > { %p5811_p9 = scmp.ne.s32.totalorder %s6855_s19, %s5810_s30  ;;  %p5816_p3 = scmp.lt.u32.totalorder %s5810_s30, %s6855_s19 }
0x13eb   : > { %p5812_p10 = pnand %p5811_p9, %p6767_p8 }
0x13ed   : > { %p5813_p11 = pneg %p5812_p10 }
0x13ef   : > { %p5818_p4 = pnand %p5816_p3, %p5813_p11 }
0x13f1   : > { %5821 = shalt.err (!%p5818_p4)
}
0x13f2   : > { %5632 = dma.vmem_to_hbm [thread:$0]  (%p6767_p8), %s4632_s6, 32, %s6855_s19, [#allocation4]  }
0x13f3   : > { %5843 = dma.done.wait (%p6767_p8), [#allocation4], 32  }
0x13f4   : > { %5845 = vsyncadd (%p6767_p8), [#allocation4], 4294967264 }
0x13f5 PF: > { %s6856_s21 = sld [smem:[#allocation13_spill]]  ;;  %s6858_s22 = sld [smem:[#allocation14_spill]] }
0x13fb   : > { %s29_s23 = sadd.s32 1, %s6856_s21   ;;  %s6857_s21 = sld [smem:[#allocation12_spill]] }
0x13fc   : > { %p26_p6 = scmp.ge.s32.totalorder %s29_s23, 4  }
0x13fe   :  { %28 = sbr.rel (!%p26_p6) target bundleno = 13 (0xd), region = 157 }
0x1405   :  { %4644 = vsyncpa [#allocation4], 1 }
0x1406   :  { %4646 = vsyncpa [#allocation4 + $0x1], 1 }
0x1407   :  { %4647 = vsyncpa [#allocation5], 1 }
0x1408   :  { %4649 = vsyncpa [#allocation5 + $0x1], 1 }
0x1409   :  { %4650 = vsyncpa [#allocation7], 1 }

</bundles_post_ra>
